<compile_context>
chip_gen: v7x
topology: tpu7x:2x2x1
jax: 0.10.0
libtpu: 0.0.40
codegen_flags: <defaults>
</compile_context>

<pallas_src>
import math

import jax
import jax.numpy as jnp
from jax.experimental import pallas as pl
from jax.experimental.pallas import tpu as pltpu

_SQRT_HALF = math.sqrt(0.5)


def _make_kernel(K, dilation, pad, halo_w, half, skip_ch):
    """Specialize the kernel on the static conv geometry."""

    def kernel(x_ref, halo_ref, c_ref, wconv_ref, bconv_ref, wc_ref,
               wso_ref, bso_ref, out_ref, skip_ref):
        x_t = x_ref[...]                              # (R, tn) bf16, also residual
        tn = x_t.shape[-1]

        # Local-conditioning 1x1 conv (no bias) seeds the gate accumulator,
        # together with the dilated-conv bias.  f32 accumulation on the MXU.
        gate = jnp.dot(wc_ref[...], c_ref[...],
                       preferred_element_type=jnp.float32) + bconv_ref[...]

        if pad > 0:
            # 128-aligned left halo ending exactly at this tile's first column.
            # Tile 0's halo is the causal zero padding.
            h = halo_ref[...] * (pl.program_id(1) > 0).astype(halo_ref.dtype)
            window = jnp.concatenate([h, x_t], axis=-1)     # (R, halo_w + tn)

        # Dilated causal conv: K accumulating matmuls over time-shifted taps.
        for j in range(K):
            shift = (K - 1 - j) * dilation
            tap = x_t if shift == 0 else window[:, halo_w - shift:
                                                halo_w - shift + tn]
            gate = gate + jnp.dot(wconv_ref[j], tap,
                                  preferred_element_type=jnp.float32)

        # Gated linear unit (f32): tanh/logistic on the EUP, multiply on the VPU.
        a = gate[:half]
        b = gate[half:]
        z = (jnp.tanh(a) * jax.nn.sigmoid(b)).astype(wso_ref.dtype)

        # Fused skip + out 1x1 convs: one (S+R, G//2) matmul, then row-split.
        so = jnp.dot(wso_ref[...], z,
                     preferred_element_type=jnp.float32) + bso_ref[...]
        skip_ref[...] = so[:skip_ch].astype(skip_ref.dtype)
        out_ref[...] = ((so[skip_ch:] + x_t.astype(jnp.float32))
                        * _SQRT_HALF).astype(out_ref.dtype)

    return kernel


def _pick_tile(t):
    # Prefer big lane tiles to amortize the ~0.35us per-grid-step overhead.
    for tn in (4096, 2048, 1024, 512, 256, 128):
        if t % tn == 0:
            return tn
    return t


def residual_conv1d_glu(x, c, w_conv, b_conv, w_c, w_skip, b_skip, w_out, b_out,
                        *, dilation=1, tn=None, out_dtype=None,
                        vmem_limit_bytes=None):
    """ResidualConv1dGLU forward (eval mode).

    x:      (B, R, T)    residual input
    c:      (B, CIN, T)  local conditioning features
    w_conv: (K, G, R)    dilated conv weight (torch weight.permute(2, 0, 1))
    b_conv: (G, 1)
    w_c:    (G, CIN)     conv1x1c weight (no bias)
    w_skip: (S, G//2),   b_skip: (S, 1)
    w_out:  (R, G//2),   b_out:  (R, 1)
    returns (out (B, R, T), skip (B, S, T)) in out_dtype (defaults to x.dtype;
    pass jnp.bfloat16 if the next layer accepts it to halve output traffic).

    vmem_limit_bytes: raise the scoped-VMEM limit (e.g. 48<<20) if you push tn
    to 4096+ on v5e (16 MiB default scoped) / v7x (32 MiB default, 64 physical).
    """
    B, R, T = x.shape
    K, G, Rw = w_conv.shape
    S = w_skip.shape[0]
    CIN = w_c.shape[1]
    assert Rw == R and G % 2 == 0
    assert T % 128 == 0, "pad T to a multiple of 128 (TPU lane width) outside"
    if out_dtype is None:
        out_dtype = x.dtype
    if tn is None:
        tn = _pick_tile(T)
    assert T % tn == 0 and tn % 128 == 0, "time tile must be a 128-multiple dividing T"
    pad = (K - 1) * dilation
    assert pad <= tn, "receptive-field halo (K-1)*dilation must fit in one time tile"
    # Smallest 128-multiple halo width that covers the receptive field and
    # divides tn, so its BlockSpec can address the window ending at the tile.
    halo_w = 128
    while halo_w < max(pad, 1) or tn % halo_w != 0:
        halo_w += 128

    # bf16 I/O (MXU-native), f32 accumulation inside the kernel.
    cdt = jnp.bfloat16
    xb = x.astype(cdt)
    cb = c.astype(cdt)
    wconv_b = w_conv.astype(cdt)                                     # (K, G, R)
    wc_b = w_c.astype(cdt)                                           # (G, CIN)
    wso_b = jnp.concatenate([w_skip, w_out], axis=0).astype(cdt)     # (S+R, G//2)
    bconv_f = b_conv.astype(jnp.float32)                             # (G, 1)
    bso_f = jnp.concatenate([b_skip, b_out], axis=0).astype(jnp.float32)

    grid = (B, T // tn)
    qh = tn // halo_w
    const2 = lambda b, t: (0, 0)
    in_specs = [
        pl.BlockSpec((pl.Squeezed(), R, tn), lambda b, t: (b, 0, t)),      # x tile
        pl.BlockSpec((pl.Squeezed(), R, halo_w),                           # left halo
                     lambda b, t: (b, 0, jnp.maximum(t * qh - 1, 0))),
        pl.BlockSpec((pl.Squeezed(), CIN, tn), lambda b, t: (b, 0, t)),    # c tile
        pl.BlockSpec((K, G, R), lambda b, t: (0, 0, 0)),                   # w_conv
        pl.BlockSpec((G, 1), const2),                                      # b_conv
        pl.BlockSpec((G, CIN), const2),                                    # w_c
        pl.BlockSpec((S + R, G // 2), const2),                             # w_skip|out
        pl.BlockSpec((S + R, 1), const2),                                  # b_skip|out
    ]
    out_specs = (
        pl.BlockSpec((pl.Squeezed(), R, tn), lambda b, t: (b, 0, t)),
        pl.BlockSpec((pl.Squeezed(), S, tn), lambda b, t: (b, 0, t)),
    )
    out_shape = (
        jax.ShapeDtypeStruct((B, R, T), out_dtype),
        jax.ShapeDtypeStruct((B, S, T), out_dtype),
    )

    kernel = _make_kernel(K, dilation, pad, halo_w, G // 2, S)

    osz = jnp.dtype(out_dtype).itemsize
    flops = 2 * B * T * (G * (K * R + CIN) + (S + R) * (G // 2))
    bytes_accessed = (B * T * (2 * R + 2 * CIN + osz * (R + S))
                      + B * (T // tn) * R * halo_w * 2
                      + 2 * (K * G * R + G * CIN + (S + R) * (G // 2))
                      + 4 * (G + S + R))
    cost = pl.CostEstimate(flops=int(flops), transcendentals=int(B * T * G),
                           bytes_accessed=int(bytes_accessed))

    return pl.pallas_call(
        kernel,
        out_shape=out_shape,
        grid_spec=pl.GridSpec(grid=grid, in_specs=in_specs, out_specs=out_specs),
        compiler_params=pltpu.CompilerParams(
            dimension_semantics=("parallel", "parallel"),
            vmem_limit_bytes=vmem_limit_bytes),
        cost_estimate=cost,
    )(xb, xb, cb, wconv_b, bconv_f, wc_b, wso_b, bso_f)


def _reference(x, c, w_conv, b_conv, w_c, w_skip, b_skip, w_out, b_out, dilation):
    """Pure-JAX mirror of the PyTorch forward (eval mode), verification only."""
    K, G, R = w_conv.shape
    T = x.shape[-1]
    pad = (K - 1) * dilation
    hp = jax.lax.Precision.HIGHEST
    xp = jnp.pad(x, ((0, 0), (0, 0), (pad, 0)))
    y = sum(jnp.einsum("oi,bit->bot", w_conv[j],
                       xp[:, :, j * dilation:j * dilation + T], precision=hp)
            for j in range(K)) + b_conv[None]
    a, b = jnp.split(y, 2, axis=1)
    ca, cb = jnp.split(jnp.einsum("oi,bit->bot", w_c, c, precision=hp), 2, axis=1)
    a, b = a + ca, b + cb
    z = jnp.tanh(a) * jax.nn.sigmoid(b)
    s = jnp.einsum("oi,bit->bot", w_skip, z, precision=hp) + b_skip[None]
    o = jnp.einsum("oi,bit->bot", w_out, z, precision=hp) + b_out[None]
    return (o + x) * math.sqrt(0.5), s


def _bf16_grid(a):
    # Snap test data to the bf16 grid so the kernel's bf16 input casts are
    # lossless and it can be checked tightly against the f32 reference.
    return a.astype(jnp.bfloat16).astype(jnp.float32)


if __name__ == "__main__":
    B, R, G, S, CIN = 2, 32, 64, 32, 16          # residual/gate/skip/cin channels
    K, D, T = 3, 2, 4096                         # kernel_size, dilation, time
    keys = jax.random.split(jax.random.PRNGKey(0), 9)
    x = _bf16_grid(jax.random.normal(keys[0], (B, R, T), jnp.float32))
    c = _bf16_grid(jax.random.normal(keys[1], (B, CIN, T), jnp.float32))
    # Effective (post weight-norm) parameters.
    w_conv = _bf16_grid(jax.random.normal(keys[2], (K, G, R)) / math.sqrt(K * R))
    b_conv = _bf16_grid(0.1 * jax.random.normal(keys[3], (G, 1)))
    w_c = _bf16_grid(jax.random.normal(keys[4], (G, CIN)) / math.sqrt(CIN))
    w_skip = _bf16_grid(jax.random.normal(keys[5], (S, G // 2)) / math.sqrt(G // 2))
    b_skip = _bf16_grid(0.1 * jax.random.normal(keys[6], (S, 1)))
    w_out = _bf16_grid(jax.random.normal(keys[7], (R, G // 2)) / math.sqrt(G // 2))
    b_out = _bf16_grid(0.1 * jax.random.normal(keys[8], (R, 1)))

    # tn=1024 (instead of the auto 4096) so the demo exercises the multi-tile
    # halo path (grid = (2, 4)) while staying tiny.
    out, skip = jax.block_until_ready(
        residual_conv1d_glu(x, c, w_conv, b_conv, w_c, w_skip, b_skip,
                            w_out, b_out, dilation=D, tn=1024))

    ref_out, ref_skip = _reference(x, c, w_conv, b_conv, w_c, w_skip, b_skip,
                                   w_out, b_out, D)
    assert out.shape == (B, R, T) and skip.shape == (B, S, T)
    # Tolerance covers the bf16 rounding of the GLU activations feeding the
    # fused skip/out matmul (inputs/weights themselves are bf16-exact).
    assert jnp.allclose(out, ref_out, atol=2e-2, rtol=2e-2), \
        float(jnp.max(jnp.abs(out - ref_out)))
    assert jnp.allclose(skip, ref_skip, atol=2e-2, rtol=2e-2), \
        float(jnp.max(jnp.abs(skip - ref_skip)))
    print("KERNEL_OK")
</pallas_src>

<mosaic_0001>
module attributes {stable_mosaic.version = 11 : i64} {
  func.func @kernel(%arg0: i32, %arg1: i32, %arg2: memref<1x32x1024xbf16, #tpu.memory_space<vmem>>, %arg3: memref<1x32x128xbf16, #tpu.memory_space<vmem>>, %arg4: memref<1x16x1024xbf16, #tpu.memory_space<vmem>>, %arg5: memref<3x64x32xbf16, #tpu.memory_space<vmem>>, %arg6: memref<64x1xf32, #tpu.memory_space<vmem>>, %arg7: memref<64x16xbf16, #tpu.memory_space<vmem>>, %arg8: memref<64x32xbf16, #tpu.memory_space<vmem>>, %arg9: memref<64x1xf32, #tpu.memory_space<vmem>>, %arg10: memref<1x32x1024xf32, #tpu.memory_space<vmem>>, %arg11: memref<1x32x1024xf32, #tpu.memory_space<vmem>>) attributes {dimension_semantics = [#tpu.dimension_semantics<parallel>, #tpu.dimension_semantics<parallel>], iteration_bounds = array<i64: 2, 4>, scalar_prefetch = 0 : i64, scratch_operands = 0 : i64, tpu.core_type = #tpu.core_type<tc>, window_params = [{transform_indices = @transform_0, window_bounds = array<i64: 1, 32, 1024>}, {transform_indices = @transform_1, window_bounds = array<i64: 1, 32, 128>}, {transform_indices = @transform_2, window_bounds = array<i64: 1, 16, 1024>}, {pipeline_mode = #tpu.pipeline_mode<synchronous>, transform_indices = @transform_3, window_bounds = array<i64: 3, 64, 32>}, {pipeline_mode = #tpu.pipeline_mode<synchronous>, transform_indices = @transform_4, window_bounds = array<i64: 64, 1>}, {pipeline_mode = #tpu.pipeline_mode<synchronous>, transform_indices = @transform_5, window_bounds = array<i64: 64, 16>}, {pipeline_mode = #tpu.pipeline_mode<synchronous>, transform_indices = @transform_6, window_bounds = array<i64: 64, 32>}, {pipeline_mode = #tpu.pipeline_mode<synchronous>, transform_indices = @transform_7, window_bounds = array<i64: 64, 1>}, {transform_indices = @transform_8, window_bounds = array<i64: 1, 32, 1024>}, {transform_indices = @transform_9, window_bounds = array<i64: 1, 32, 1024>}]} {
    %c0 = arith.constant 0 : index
    %c0_0 = arith.constant 0 : index
    %c0_1 = arith.constant 0 : index
    %0 = vector.load %arg2[%c0, %c0_0, %c0_1] : memref<1x32x1024xbf16, #tpu.memory_space<vmem>>, vector<1x32x1024xbf16>
    %1 = vector.shape_cast %0 : vector<1x32x1024xbf16> to vector<32x1024xbf16>
    %c0_2 = arith.constant 0 : index
    %c0_3 = arith.constant 0 : index
    %2 = vector.load %arg7[%c0_2, %c0_3] : memref<64x16xbf16, #tpu.memory_space<vmem>>, vector<64x16xbf16>
    %c0_4 = arith.constant 0 : index
    %c0_5 = arith.constant 0 : index
    %c0_6 = arith.constant 0 : index
    %3 = vector.load %arg4[%c0_4, %c0_5, %c0_6] : memref<1x16x1024xbf16, #tpu.memory_space<vmem>>, vector<1x16x1024xbf16>
    %4 = vector.shape_cast %3 : vector<1x16x1024xbf16> to vector<16x1024xbf16>
    %cst = arith.constant dense<0.000000e+00> : vector<64x1024xf32>
    %5 = tpu.matmul %2, %4, %cst {dimension_numbers = #tpu.dot_dimension_numbers<[1], [0], [0], [1], [0, 0, 1, 1], [], []>} : vector<64x16xbf16>, vector<16x1024xbf16>, vector<64x1024xf32> -> vector<64x1024xf32>
    %c0_7 = arith.constant 0 : index
    %c0_8 = arith.constant 0 : index
    %6 = vector.load %arg6[%c0_7, %c0_8] : memref<64x1xf32, #tpu.memory_space<vmem>>, vector<64x1xf32>
    %7 = vector.broadcast %6 : vector<64x1xf32> to vector<64x1024xf32>
    %8 = arith.addf %5, %7 : vector<64x1024xf32>
    %c0_9 = arith.constant 0 : index
    %c0_10 = arith.constant 0 : index
    %c0_11 = arith.constant 0 : index
    %9 = vector.load %arg3[%c0_9, %c0_10, %c0_11] : memref<1x32x128xbf16, #tpu.memory_space<vmem>>, vector<1x32x128xbf16>
    %10 = vector.shape_cast %9 : vector<1x32x128xbf16> to vector<32x128xbf16>
    %c0_i32 = arith.constant 0 : i32
    %11 = arith.cmpi sgt, %arg1, %c0_i32 : i32
    %12 = arith.extui %11 : i1 to i32
    %13 = arith.sitofp %12 : i32 to f32
    %14 = arith.truncf %13 : f32 to bf16
    %15 = vector.broadcast %14 : bf16 to vector<32x128xbf16>
    %16 = arith.mulf %10, %15 : vector<32x128xbf16>
    %17 = tpu.concatenate %16, %1 in 1 : vector<32x128xbf16>, vector<32x1024xbf16> -> vector<32x1152xbf16>
    %18 = vector.extract_strided_slice %17 {offsets = [0, 124], sizes = [32, 1024], strides = [1, 1]} : vector<32x1152xbf16> to vector<32x1024xbf16>
    %c0_12 = arith.constant 0 : index
    %c0_13 = arith.constant 0 : index
    %c0_14 = arith.constant 0 : index
    %19 = vector.load %arg5[%c0_12, %c0_13, %c0_14] : memref<3x64x32xbf16, #tpu.memory_space<vmem>>, vector<1x64x32xbf16>
    %20 = vector.shape_cast %19 : vector<1x64x32xbf16> to vector<64x32xbf16>
    %cst_15 = arith.constant dense<0.000000e+00> : vector<64x1024xf32>
    %21 = tpu.matmul %20, %18, %cst_15 {dimension_numbers = #tpu.dot_dimension_numbers<[1], [0], [0], [1], [0, 0, 1, 1], [], []>} : vector<64x32xbf16>, vector<32x1024xbf16>, vector<64x1024xf32> -> vector<64x1024xf32>
    %22 = arith.addf %8, %21 : vector<64x1024xf32>
    %23 = vector.extract_strided_slice %17 {offsets = [0, 126], sizes = [32, 1024], strides = [1, 1]} : vector<32x1152xbf16> to vector<32x1024xbf16>
    %c1 = arith.constant 1 : index
    %c0_16 = arith.constant 0 : index
    %c0_17 = arith.constant 0 : index
    %24 = vector.load %arg5[%c1, %c0_16, %c0_17] : memref<3x64x32xbf16, #tpu.memory_space<vmem>>, vector<1x64x32xbf16>
    %25 = vector.shape_cast %24 : vector<1x64x32xbf16> to vector<64x32xbf16>
    %cst_18 = arith.constant dense<0.000000e+00> : vector<64x1024xf32>
    %26 = tpu.matmul %25, %23, %cst_18 {dimension_numbers = #tpu.dot_dimension_numbers<[1], [0], [0], [1], [0, 0, 1, 1], [], []>} : vector<64x32xbf16>, vector<32x1024xbf16>, vector<64x1024xf32> -> vector<64x1024xf32>
    %27 = arith.addf %22, %26 : vector<64x1024xf32>
    %c2 = arith.constant 2 : index
    %c0_19 = arith.constant 0 : index
    %c0_20 = arith.constant 0 : index
    %28 = vector.load %arg5[%c2, %c0_19, %c0_20] : memref<3x64x32xbf16, #tpu.memory_space<vmem>>, vector<1x64x32xbf16>
    %29 = vector.shape_cast %28 : vector<1x64x32xbf16> to vector<64x32xbf16>
    %cst_21 = arith.constant dense<0.000000e+00> : vector<64x1024xf32>
    %30 = tpu.matmul %29, %1, %cst_21 {dimension_numbers = #tpu.dot_dimension_numbers<[1], [0], [0], [1], [0, 0, 1, 1], [], []>} : vector<64x32xbf16>, vector<32x1024xbf16>, vector<64x1024xf32> -> vector<64x1024xf32>
    %31 = arith.addf %27, %30 : vector<64x1024xf32>
    %32 = vector.extract_strided_slice %31 {offsets = [0, 0], sizes = [32, 1024], strides = [1, 1]} : vector<64x1024xf32> to vector<32x1024xf32>
    %33 = vector.extract_strided_slice %31 {offsets = [32, 0], sizes = [32, 1024], strides = [1, 1]} : vector<64x1024xf32> to vector<32x1024xf32>
    %34 = math.tanh %32 : vector<32x1024xf32>
    %35 = arith.negf %33 : vector<32x1024xf32>
    %36 = math.exp %35 : vector<32x1024xf32>
    %cst_22 = arith.constant 1.000000e+00 : f32
    %37 = vector.broadcast %cst_22 : f32 to vector<32x1024xf32>
    %38 = arith.addf %37, %36 : vector<32x1024xf32>
    %39 = arith.divf %37, %38 : vector<32x1024xf32>
    %40 = arith.mulf %34, %39 : vector<32x1024xf32>
    %41 = arith.truncf %40 : vector<32x1024xf32> to vector<32x1024xbf16>
    %c0_23 = arith.constant 0 : index
    %c0_24 = arith.constant 0 : index
    %42 = vector.load %arg8[%c0_23, %c0_24] : memref<64x32xbf16, #tpu.memory_space<vmem>>, vector<64x32xbf16>
    %cst_25 = arith.constant dense<0.000000e+00> : vector<64x1024xf32>
    %43 = tpu.matmul %42, %41, %cst_25 {dimension_numbers = #tpu.dot_dimension_numbers<[1], [0], [0], [1], [0, 0, 1, 1], [], []>} : vector<64x32xbf16>, vector<32x1024xbf16>, vector<64x1024xf32> -> vector<64x1024xf32>
    %c0_26 = arith.constant 0 : index
    %c0_27 = arith.constant 0 : index
    %44 = vector.load %arg9[%c0_26, %c0_27] : memref<64x1xf32, #tpu.memory_space<vmem>>, vector<64x1xf32>
    %45 = vector.broadcast %44 : vector<64x1xf32> to vector<64x1024xf32>
    %46 = arith.addf %43, %45 : vector<64x1024xf32>
    %47 = vector.extract_strided_slice %46 {offsets = [0, 0], sizes = [32, 1024], strides = [1, 1]} : vector<64x1024xf32> to vector<32x1024xf32>
    %c0_28 = arith.constant 0 : index
    %c0_29 = arith.constant 0 : index
    %c0_30 = arith.constant 0 : index
    %48 = vector.load %arg11[%c0_28, %c0_29, %c0_30] : memref<1x32x1024xf32, #tpu.memory_space<vmem>>, vector<1x32x1024xf32>
    %49 = vector.shape_cast %48 : vector<1x32x1024xf32> to vector<32x1024xf32>
    %50 = vector.shape_cast %47 : vector<32x1024xf32> to vector<1x32x1024xf32>
    tpu.vector_store %arg11[%c0_28, %c0_29, %c0_30], %50 {strides = array<i32>} : memref<1x32x1024xf32, #tpu.memory_space<vmem>>, vector<1x32x1024xf32>,
    %51 = vector.extract_strided_slice %46 {offsets = [32, 0], sizes = [32, 1024], strides = [1, 1]} : vector<64x1024xf32> to vector<32x1024xf32>
    %52 = arith.extf %1 : vector<32x1024xbf16> to vector<32x1024xf32>
    %53 = arith.addf %51, %52 : vector<32x1024xf32>
    %cst_31 = arith.constant 0.707106769 : f32
    %54 = vector.broadcast %cst_31 : f32 to vector<32x1024xf32>
    %55 = arith.mulf %53, %54 : vector<32x1024xf32>
    %c0_32 = arith.constant 0 : index
    %c0_33 = arith.constant 0 : index
    %c0_34 = arith.constant 0 : index
    %56 = vector.load %arg10[%c0_32, %c0_33, %c0_34] : memref<1x32x1024xf32, #tpu.memory_space<vmem>>, vector<1x32x1024xf32>
    %57 = vector.shape_cast %56 : vector<1x32x1024xf32> to vector<32x1024xf32>
    %58 = vector.shape_cast %55 : vector<32x1024xf32> to vector<1x32x1024xf32>
    tpu.vector_store %arg10[%c0_32, %c0_33, %c0_34], %58 {strides = array<i32>} : memref<1x32x1024xf32, #tpu.memory_space<vmem>>, vector<1x32x1024xf32>,
    return
  }
  func.func @transform_0(%arg0: i32, %arg1: i32) -> (i32, i32, i32) {
    %c0_i32 = arith.constant 0 : i32
    %c0_i32_0 = arith.constant 0 : i32
    return %arg0, %c0_i32, %arg1 : i32, i32, i32
  }
  func.func @transform_1(%arg0: i32, %arg1: i32) -> (i32, i32, i32) {
    %c8_i32 = arith.constant 8 : i32
    %0 = arith.muli %arg1, %c8_i32 : i32
    %c1_i32 = arith.constant 1 : i32
    %1 = arith.subi %0, %c1_i32 : i32
    %c0_i32 = arith.constant 0 : i32
    %2 = arith.maxsi %1, %c0_i32 : i32
    %c0_i32_0 = arith.constant 0 : i32
    %c0_i32_1 = arith.constant 0 : i32
    return %arg0, %c0_i32_0, %2 : i32, i32, i32
  }
  func.func @transform_2(%arg0: i32, %arg1: i32) -> (i32, i32, i32) {
    %c0_i32 = arith.constant 0 : i32
    %c0_i32_0 = arith.constant 0 : i32
    return %arg0, %c0_i32, %arg1 : i32, i32, i32
  }
  func.func @transform_3(%arg0: i32, %arg1: i32) -> (i32, i32, i32) {
    %c0_i32 = arith.constant 0 : i32
    %c0_i32_0 = arith.constant 0 : i32
    %c0_i32_1 = arith.constant 0 : i32
    %c0_i32_2 = arith.constant 0 : i32
    return %c0_i32, %c0_i32_0, %c0_i32_1 : i32, i32, i32
  }
  func.func @transform_4(%arg0: i32, %arg1: i32) -> (i32, i32) {
    %c0_i32 = arith.constant 0 : i32
    %c0_i32_0 = arith.constant 0 : i32
    %c0_i32_1 = arith.constant 0 : i32
    return %c0_i32, %c0_i32_0 : i32, i32
  }
  func.func @transform_5(%arg0: i32, %arg1: i32) -> (i32, i32) {
    %c0_i32 = arith.constant 0 : i32
    %c0_i32_0 = arith.constant 0 : i32
    %c0_i32_1 = arith.constant 0 : i32
    return %c0_i32, %c0_i32_0 : i32, i32
  }
  func.func @transform_6(%arg0: i32, %arg1: i32) -> (i32, i32) {
    %c0_i32 = arith.constant 0 : i32
    %c0_i32_0 = arith.constant 0 : i32
    %c0_i32_1 = arith.constant 0 : i32
    return %c0_i32, %c0_i32_0 : i32, i32
  }
  func.func @transform_7(%arg0: i32, %arg1: i32) -> (i32, i32) {
    %c0_i32 = arith.constant 0 : i32
    %c0_i32_0 = arith.constant 0 : i32
    %c0_i32_1 = arith.constant 0 : i32
    return %c0_i32, %c0_i32_0 : i32, i32
  }
  func.func @transform_8(%arg0: i32, %arg1: i32) -> (i32, i32, i32) {
    %c0_i32 = arith.constant 0 : i32
    %c0_i32_0 = arith.constant 0 : i32
    return %arg0, %c0_i32, %arg1 : i32, i32, i32
  }
  func.func @transform_9(%arg0: i32, %arg1: i32) -> (i32, i32, i32) {
    %c0_i32 = arith.constant 0 : i32
    %c0_i32_0 = arith.constant 0 : i32
    return %arg0, %c0_i32, %arg1 : i32, i32, i32
  }
}

</mosaic_0001>

<bundles_post_ra>
// kernel: tpu_custom_call.1
= control target key start
LH: loop header
LB: loop body
LE: loop exit
PB: predicated region body
PF: predicated region fallthrough
CT: control target
= control target key end

     0   :  { %s5926_s0 = inlined_call_operand.hbm [shape: bf16[2,32,4096], index: 0, kind: input, shape index: {}]   ;;  %s5927_s1 = inlined_call_operand.hbm [shape: bf16[2,32,4096], index: 1, kind: input, shape index: {}]   ;;  %s5928_s2 = inlined_call_operand.hbm [shape: bf16[2,16,4096], index: 2, kind: input, shape index: {}]   ;;  %s5929_s3 = inlined_call_operand.vmem [shape: bf16[3,64,32], index: 3, kind: input, shape index: {}]   ;;  %s5930_s4 = inlined_call_operand.vmem [shape: f32[64,1], index: 4, kind: input, shape index: {}]   ;;  %s5931_s5 = inlined_call_operand.vmem [shape: bf16[64,16], index: 5, kind: input, shape index: {}]   ;;  %s5932_s6 = inlined_call_operand.vmem [shape: bf16[64,32], index: 6, kind: input, shape index: {}]   ;;  %s5933_s7 = inlined_call_operand.vmem [shape: f32[64,1], index: 7, kind: input, shape index: {}]   ;;  %s5934_s8 = inlined_call_operand.hbm [shape: f32[2,32,4096], index: 8, kind: output, shape index: {0}]   ;;  %s5935_s9 = inlined_call_operand.hbm [shape: f32[2,32,4096], index: 9, kind: output, shape index: {1}]  }
   0x1   :  { %5959 = sst [smem:[#allocation27_spill]] %s5926_s0 }
   0x2   :  { %5960 = sst [smem:[#allocation28_spill]] %s5927_s1 }
   0x3   :  { %5961 = sst [smem:[#allocation29_spill]] %s5929_s3 }
   0x4   :  { %5962 = sst [smem:[#allocation30_spill]] %s5930_s4 }
   0x5   :  { %5963 = sst [smem:[#allocation31_spill]] %s5932_s6 }
   0x6   :  { %5964 = sst [smem:[#allocation32_spill]] %s5933_s7 }
   0x7   :  { %5965 = sst [smem:[#allocation33_spill]] %s5934_s8 }
   0x8   :  { %5966 = sst [smem:[#allocation34_spill]] %s5935_s9 }
   0x9   :  { %15 = vsyncpa [#allocation3], 0 }
   0xa   :  { %17 = vsyncpa [#allocation3 + $0x1], 0 }
   0xb   :  { %18 = vsyncpa [#allocation6], 0 }
   0xc   :  { %20 = vsyncpa [#allocation6 + $0x1], 0 }
   0xd   :  { %21 = vsyncpa [#allocation4], 0 }
   0xe   :  { %23 = vsyncpa [#allocation4 + $0x1], 0 }
   0xf   :  { %24 = vsyncpa [#allocation10], 0 }
  0x10   :  { %26 = vsyncpa [#allocation10 + $0x1], 0  ;;  %s4545_s30 = smov 0   ;;  %s4547_s10 = smov 0  }
  0x11   :  { %s4549_s11 = smov 0   ;;  %s4551_s12 = smov 0  }
  0x12   :  { %s4553_s13 = smov 0   ;;  %s4555_s14 = smov 0  }
  0x13   :  { %s4557_s15 = smov 0   ;;  %s4559_s16 = smov 0  }
  0x14   :  { %s4561_s17 = smov 0   ;;  %s4563_s18 = smov 0  }
  0x15   :  { %s4565_s19 = smov 0  }
  0x16 LB: > { %5967 = sst [smem:[#allocation16_spill]] %s4445_s11  ;;  %s4601_s20 = sadd.s32 4294967295, %s4477_s19   ;;  %s4477_s19 = sphi %s4565_s19, %s32_s19   ;;  %s4473_s18 = sphi %s4563_s18, %s6023_s18   ;;  %s4469_s17 = sphi %s4561_s17, %s6015_s17   ;;  %s4465_s16 = sphi %s4559_s16, %s6022_s16   ;;  %s4461_s15 = sphi %s4557_s15, %s6014_s15   ;;  %s4457_s14 = sphi %s4555_s14, %s6013_s14   ;;  %s4453_s13 = sphi %s4553_s13, %s6021_s13   ;;  %s4449_s12 = sphi %s4551_s12, %s6020_s12   ;;  %s4445_s11 = sphi %s4549_s11, %s6019_s11   ;;  %s4441_s10 = sphi %s4547_s10, %s6018_s10   ;;  %s4437_s30 = sphi %s4545_s30, %s6017_s30  }
  0x17   : > { %5968 = sst [smem:[#allocation17_spill]] %s4449_s12  ;;  %s41_s21 = sadd.s32 1, %s4469_s17 }
  0x18   : > { %5969 = sst [smem:[#allocation18_spill]] %s4457_s14  ;;  %p42_p0 = scmp.ge.s32.totalorder %s41_s21, 4 }
  0x19   : > { %5970 = sst [smem:[#allocation19_spill]] %s4465_s16  ;;  %s44_s22 = sadd.s32 1, %s4473_s18 }
  0x1a   : > { %5971 = sst [smem:[#allocation20_spill]] %s4469_s17  ;;  %p5947_p1 = scmp.eq.s32.totalorder %s4477_s19, 0 }
  0x1b   : > { %5972 = sst [smem:[#allocation21_spill]] %s4477_s19  ;;  %p5946_p2 = scmp.eq.s32.totalorder %s4601_s20, 0 }
  0x1c   : > { %s6025_s21 = smov (%p42_p0, %s41_s21), 0  ;;  %s6027_s22 = smov (!%p42_p0, %s44_s22), %s4473_s18 }
  0x1d   : > { %5973 = sst [smem:[#allocation22_spill]] %s6025_s21  ;;  %s49_s23 = ssub.s32 %s4469_s17, %s6025_s21 }
  0x1e   : > { %s4613_s24 = sshll.u32 %s4469_s17, 3  ;;  %p46_p3 = scmp.ge.s32.totalorder %s6027_s22, 2 }
  0x1f   : > { %s3403_s25 = sadd.s32 4294967295, %s4613_s24  ;;  %s3404_s26 = sshll.u32 %s6025_s21, 3 }
  0x20   : > { %p78_p4 = scmp.gt.s32.totalorder %s3403_s25, 0  ;;  %s6029_s22 = smov (%p46_p3, %s6027_s22), 0 }
  0x21   : > { %5974 = sst [smem:[#allocation23_spill]] %s6029_s22  ;;  %s48_s27 = ssub.s32 %s4473_s18, %s6029_s22 }
  0x22   : > { %s6031_s25 = smov (!%p78_p4, %s3403_s25), 0  ;;  %s3405_s28 = sadd.s32 4294967295, %s3404_s26 }
  0x23   : > { %s4621_s29 = sor.u32 %s49_s23, %s48_s27  ;;  %p82_p5 = scmp.gt.s32.totalorder %s3405_s28, 0 }
  0x24   : > { %s89_s17 = sadd.s32 1, %s4445_s11  ;;  %p96_p7 = scmp.ne.s32.totalorder %s4445_s11, %s4441_s10 }
  0x25   : > { %s6033_s28 = smov (!%p82_p5, %s3405_s28), 0  ;;  %p102_p8 = scmp.ne.s32.totalorder %s4441_s10, %s4437_s30 }
  0x26   : > { %s85_s21 = ssub.s32 %s6031_s25, %s6033_s28  ;;  %p4631_p9 = por %p96_p7, %p5947_p1 }
  0x27   : > { %s86_s8 = sor.u32 %s85_s21, %s48_s27  ;;  %p4637_p11 = por %p102_p8, %p5946_p2 }
  0x28   : > { %p87_p10 = scmp.eq.s32.totalorder %s86_s8, 0  ;;  %p5945_p12 = scmp.lt.s32.totalorder %s4477_s19, 8 }
  0x29   : > { %s5976_s23 = scalar_select %p4637_p11, 1, 0 }
  0x2a   : > { %s3410_s26 = sshll.u32 %s4473_s18, 7  ;;  %s353_s30 = sand.u32 1, %s4477_s19  }
  0x2b   : > { %s4644_s9 = scalar_select %p87_p10, %s4445_s11, %s89_s17  }
  0x2c   : > { %s355_s21 = sand.u32 1, %s4445_s11   ;;  %s366_s28 = sadd.s32 %s3410_s26, %s6031_s25 }
  0x2d   : > { %5977 = sst [smem:[#allocation24_spill]] %s4644_s9  ;;  %s3412_s27 = sshll.u32 %s355_s21, 4 }
  0x2e   : > { %s3416_s16 = sshll.u32 %s366_s28, 6  ;;  %s5978_s1 = sld [smem:[#allocation28_spill]] }
  0x2f   : > { %s357_s8 = scalar_lea.vmem [#allocation5], %s3412_s27  ;;  %p4661_p13 = pnand %p5945_p12, %p4631_p9 }
  0x30   : > { %s369_s3 = sshll.u32 %s357_s8, 4  ;;  %s4666_s6 = scalar_lea.sflag [#allocation6], %s353_s30  ;;  %s4655_s3 = int_to_ptr.vmem [resolvable:$true] %s369_s3 }
  0x31   : > { %p4227_p4 = pneg %p4661_p13 }
  0x34   : > { %s4653_s4 = scalar_lea.hbm %s5978_s1, %s3416_s16  ;;  %s4230_s25 = scalar_lea.hbm %s5978_s1, 16384 }
  0x35   : > { %s4225_s7 = scalar_lea.hbm %s4653_s4, 256  ;;  %p4231_p8 = scmp.lt.u32.totalorder %s4653_s4, %s5978_s1 }
  0x36   : > { %p4226_p3 = scmp.ne.s32.totalorder %s4653_s4, %s4225_s7  ;;  %p4232_p9 = scmp.lt.u32.totalorder %s4230_s25, %s4225_s7 }
  0x37   : > { %p4234_p12 = scmp.lt.u32.totalorder %s4225_s7, %s4653_s4 }
  0x38   : > { %p4228_p5 = pnand %p4227_p4, %p4226_p3  ;;  %p4233_p10 = por %p4232_p9, %p4231_p8 }
  0x3a   : > { %p4229_p7 = pneg %p4228_p5  ;;  %p4235_p2 = por %p4234_p12, %p4233_p10 }
  0x3c   : > { %p4236_p1 = pnand %p4235_p2, %p4229_p7 }
  0x3e   : > { %4239 = shalt.err (!%p4236_p1)
}
  0x3f   : > { %s4240_s30 = scalar_lea.vmem %s4655_s3, 256  ;;  %s4479_s28 = smov [#allocation5]  }
  0x40   : > { %p4241_p3 = scmp.ne.s32.totalorder %s4655_s3, %s4240_s30  ;;  %s4245_s8 = sshll.u32 %s4479_s28, 4  ;;  %s4246_s8 = int_to_ptr.vmem [resolvable:$false] %s4245_s8 }
  0x41   : > { %s4247_s16 = scalar_lea.vmem %s4246_s8, 512  ;;  %p4248_p0 = scmp.lt.s32.totalorder %s4655_s3, %s4246_s8 }
  0x42   : > { %p4243_p5 = pnand %p4241_p3, %p4227_p4  ;;  %p4249_p8 = scmp.lt.s32.totalorder %s4247_s16, %s4240_s30 }
  0x44   : > { %p4244_p6 = pneg %p4243_p5  ;;  %p4250_p9 = por %p4249_p8, %p4248_p0 }
  0x46   : > { %p4251_p12 = pnand %p4250_p9, %p4244_p6 }
  0x48   : > { %4254 = shalt.err (!%p4251_p12)
}
  0x49   : > { %s5948_s7 = smov 2048   ;;  %s4481_s22 = smov 64  }
  0x4a   : > { %s4482_s25 = smov 4   ;;  %p400_p1 = scmp.lt.s32.totalorder %s4477_s19, 9 }
  0x4b   : > { %3883 = dma.hbm_to_vmem [thread:$0]  (!%p4661_p13), %s4653_s4, 256, %s4655_s3, %s4666_s6, %s5948_s7, %s4481_s22, %s4482_s25  }
  0x4c   : > { %p5980_p2 = scmp.ge.s32.totalorder %s4477_s19, 1  ;;  %s3401_s27 = sadd.s32 4294967294, %s4477_s19  }
  0x4d   : > { %s53_s30 = sadd.s32 1, %s4457_s14  ;;  %p5982_p0 = scmp.eq.s32.totalorder %s4621_s29, 0 }
  0x4e   : > { %p4698_p6 = pnand %p5980_p2, %p400_p1  ;;  %p60_p4 = scmp.ne.s32.totalorder %s4457_s14, %s4453_s13 }
  0x4f   : > { %s4707_s28 = scalar_select %p5982_p0, %s4457_s14, %s53_s30  }
  0x50   : > { %p66_p7 = scmp.ne.s32.totalorder %s4453_s13, %s4449_s12  ;;  %p261_p10 = scmp.eq.s32.totalorder %s4601_s20, 7 }
  0x51   : > { %5983 = sst [smem:[#allocation25_spill]] %s4707_s28  ;;  %p267_p3 = scmp.eq.s32.totalorder %s3401_s27, 7 }
  0x52   : > { %p5984_p5 = scmp.eq.s32.totalorder %s4477_s19, 0  ;;  %p5985_p9 = scmp.eq.s32.totalorder %s4601_s20, 0 }
  0x53   : > { %p4722_p12 = por %p261_p10, %p60_p4  ;;  %p4726_p1 = por %p267_p3, %p66_p7 }
  0x54   : > { %p62_p8 = por %p5984_p5, %p60_p4  ;;  %p4718_p13 = por %p5985_p9, %p66_p7 }
  0x55   : > { %s5987_s4 = scalar_select %p4722_p12, 1, 0 }
  0x56   : > { %s5986_s3 = scalar_select %p4718_p13, 1, 0 }
  0x57   : > { %s5988_s29 = scalar_select %p4726_p1, 1, 0 }
  0x58   : > { %s4731_s17 = sand.u32 1, %s4457_s14   ;;  %s340_s8 = sadd.s32 %s3410_s26, %s4613_s24 }
  0x59   : > { %5989 = sst [smem:[#allocation26_spill]] %s5988_s29  ;;  %s3408_s16 = sshll.u32 %s4731_s17, 7 }
  0x5a   : > { %s3411_s22 = sshll.u32 %s340_s8, 6  ;;  %s5990_s0 = sld [smem:[#allocation27_spill]] }
  0x5b   : > { %s334_s7 = scalar_lea.vmem [#allocation2], %s3408_s16  ;;  %p5991_p2 = scmp.lt.s32.totalorder %s4477_s19, 8 }
  0x5c   : > { %s343_s1 = sshll.u32 %s334_s7, 4  ;;  %s331_s8 = scalar_lea.sflag [#allocation3], %s4731_s17  ;;  %s4742_s1 = int_to_ptr.vmem [resolvable:$true] %s343_s1 }
  0x5d   : > { %p4746_p0 = pnand %p5991_p2, %p62_p8 }
  0x5f   : > { %p4257_p7 = pneg %p4746_p0 }
  0x60   : > { %s4740_s30 = scalar_lea.hbm %s5990_s0, %s3411_s22  ;;  %s4260_s22 = scalar_lea.hbm %s5990_s0, 16384 }
  0x61   : > { %s4255_s25 = scalar_lea.hbm %s4740_s30, 2048  ;;  %p4261_p5 = scmp.lt.u32.totalorder %s4740_s30, %s5990_s0 }
  0x62   : > { %p4256_p4 = scmp.ne.s32.totalorder %s4740_s30, %s4255_s25  ;;  %p4262_p8 = scmp.lt.u32.totalorder %s4260_s22, %s4255_s25 }
  0x63   : > { %p4264_p2 = scmp.lt.u32.totalorder %s4255_s25, %s4740_s30 }
  0x64   : > { %p4258_p10 = pnand %p4257_p7, %p4256_p4  ;;  %p4263_p9 = por %p4262_p8, %p4261_p5 }
  0x66   : > { %p4259_p3 = pneg %p4258_p10  ;;  %p4265_p1 = por %p4264_p2, %p4263_p9 }
  0x68   : > { %p4266_p12 = pnand %p4265_p1, %p4259_p3 }
  0x6a   : > { %4269 = shalt.err (!%p4266_p12)
}
  0x6b   : > { %s4270_s26 = scalar_lea.vmem %s4742_s1, 2048  ;;  %s4483_s7 = smov [#allocation2]  }
  0x6c   : > { %p4271_p4 = scmp.ne.s32.totalorder %s4742_s1, %s4270_s26  ;;  %s4275_s16 = sshll.u32 %s4483_s7, 4  ;;  %s4276_s16 = int_to_ptr.vmem [resolvable:$false] %s4275_s16 }
  0x6d   : > { %s4277_s14 = scalar_lea.vmem %s4276_s16, 4096  ;;  %p4278_p13 = scmp.lt.s32.totalorder %s4742_s1, %s4276_s16 }
  0x6e   : > { %p4273_p10 = pnand %p4271_p4, %p4257_p7  ;;  %p4279_p5 = scmp.lt.s32.totalorder %s4277_s14, %s4270_s26 }
  0x70   : > { %p4274_p11 = pneg %p4273_p10  ;;  %p4280_p8 = por %p4279_p5, %p4278_p13 }
  0x72   : > { %p4281_p9 = pnand %p4280_p8, %p4274_p11 }
  0x74   : > { %4284 = shalt.err (!%p4281_p9)
}
  0x75   : > { %s4484_s25 = smov 512   ;;  %s4485_s22 = smov 32  }
  0x76   : > { %s5993_s27 = smov 2048   ;;  %s3419_s26 = sshll.u32 %s4473_s18, 6 }
  0x77   : > { %3880 = dma.hbm_to_vmem [thread:$0]  (!%p4746_p0), %s4740_s30, 2048, %s4742_s1, %s331_s8, %s5993_s27, %s4484_s25, %s4485_s22  }
  0x78   : > { %s389_s7 = sadd.s32 %s3419_s26, %s4613_s24  ;;  %s5994_s16 = sshll.u32 %s4731_s17, 6 }
  0x79   : > { %s383_s14 = scalar_lea.vmem [#allocation7], %s5994_s16  ;;  %s3420_s9 = sshll.u32 %s389_s7, 6 }
  0x7a   : > { %s392_s0 = sshll.u32 %s383_s14, 4  ;;  %s4791_s12 = scalar_lea.hbm %s5928_s2, %s3420_s9  ;;  %s4786_s0 = int_to_ptr.vmem [resolvable:$true] %s392_s0 }
  0x7b   : > { %s4285_s19 = scalar_lea.hbm %s4791_s12, 1024  ;;  %s4290_s17 = scalar_lea.hbm %s5928_s2, 8192 }
  0x7c   : > { %p4286_p11 = scmp.ne.s32.totalorder %s4791_s12, %s4285_s19  ;;  %p4291_p1 = scmp.lt.u32.totalorder %s4791_s12, %s5928_s2 }
  0x7d   : > { %p4292_p3 = scmp.lt.u32.totalorder %s4290_s17, %s4285_s19  ;;  %p4294_p4 = scmp.lt.u32.totalorder %s4285_s19, %s4791_s12 }
  0x7e   : > { %p4288_p13 = pnand %p4286_p11, %p4257_p7 }
  0x7f   : > { %p4293_p2 = por %p4292_p3, %p4291_p1 }
  0x80   : > { %p4289_p12 = pneg %p4288_p13 }
  0x81   : > { %p4295_p10 = por %p4294_p4, %p4293_p2 }
  0x83   : > { %p4296_p5 = pnand %p4295_p10, %p4289_p12 }
  0x85   : > { %4299 = shalt.err (!%p4296_p5)
}
  0x86   : > { %s4300_s9 = scalar_lea.vmem %s4786_s0, 1024  ;;  %s4486_s11 = smov [#allocation7]  }
  0x87   : > { %p4301_p8 = scmp.ne.s32.totalorder %s4786_s0, %s4300_s9  ;;  %s4305_s29 = sshll.u32 %s4486_s11, 4  ;;  %s4306_s29 = int_to_ptr.vmem [resolvable:$false] %s4305_s29 }
  0x88   : > { %s4307_s26 = scalar_lea.vmem %s4306_s29, 2048  ;;  %p4308_p13 = scmp.lt.s32.totalorder %s4786_s0, %s4306_s29 }
  0x89   : > { %p4303_p9 = pnand %p4301_p8, %p4257_p7  ;;  %p4309_p1 = scmp.lt.s32.totalorder %s4307_s26, %s4300_s9 }
  0x8b   : > { %p4304_p11 = pneg %p4303_p9  ;;  %p4310_p3 = por %p4309_p1, %p4308_p13 }
  0x8d   : > { %p4311_p2 = pnand %p4310_p3, %p4304_p11 }
  0x8f   : > { %4314 = shalt.err (!%p4311_p2)
}
  0x90   : > { %3886 = dma.hbm_to_vmem [thread:$0]  (!%p4746_p0), %s4791_s12, 1024, %s4786_s0, %s4666_s6, %s5993_s27, %s4484_s25, %s4485_s22  }
  0x91   : > { %404 = sbr.rel (%p4698_p6) target bundleno = 1045 (0x415), region = 52  ;;  %s4823_s19 = sand.u32 (!%p4698_p6), 1, %s4453_s13  }
  0x92   : > { %s3422_s7 = sshll.u32 (!%p4698_p6), %s4823_s19, 7  ;;  %s407_s16 = scalar_lea.sflag (!%p4698_p6), [#allocation3], %s4823_s19 }
  0x93   : > { %s4827_s14 = scalar_lea.vmem (!%p4698_p6), [#allocation2], %s3422_s7  ;;  %p5995_p7 = scmp.ne.s32.totalorder (!%p4698_p6), %s5986_s3, 0 }
  0x98   : > { %4416 = dma.done.wait (%p5995_p7), %s407_s16, 2048  }
  0x99   : > { %4418 = vsyncadd (%p5995_p7), %s407_s16, 4294965248  ;;  %s415_s0 = sand.u32 1, %s4601_s20   ;;  %s417_s12 = sand.u32 1, %s4441_s10  }
  0x9a   : > { %s3423_s6 = sshll.u32 %s417_s12, 4  ;;  %s416_s21 = scalar_lea.sflag [#allocation6], %s415_s0 }
  0x9b   : > { %s4835_s28 = scalar_lea.vmem [#allocation5], %s3423_s6  ;;  %p5996_p6 = scmp.ne.s32.totalorder %s5976_s23, 0 }
  0x9d   : > { %4420 = dma.done.wait (%p5996_p6), %s416_s21, 256  }
  0x9e   : > { %4422 = vsyncadd (%p5996_p6), %s416_s21, 4294967040  ;;  %s3424_s25 = sshll.u32 %s4823_s19, 6 }
  0x9f   : > { %s4842_s22 = scalar_lea.vmem [#allocation7], %s3424_s25 }
  0xa0   : > { %4424 = dma.done.wait (%p5995_p7), %s416_s21, 1024  }
  0xa1   : > { %4426 = vsyncadd (%p5995_p7), %s416_s21, 4294966272  ;;  %p936_p0 = scmp.gt.s32.totalorder %s4461_s15, 0  ;;  %v4487_v0 = vmov 0   ;;  %v488_v1 = vld [vmem:[%s4827_s14 + $0x8] sm:$0xff]  ;;  %v487_v3 = vld [vmem:[%s4827_s14] sm:$0xff]  ;;  %s4488_s17 = smov 4  }
  0xa2   : > { %672 = vmatprep.mubr.bf16.mxu0 %v4487_v0  ;;  %745 = vmatprep.mubr.bf16.mxu1 %v4487_v0  ;;  %v492_v2 = vld [vmem:[%s4827_s14 + $0x28] sm:$0xff]  ;;  %v491_v5 = vld [vmem:[%s4827_s14 + $0x20] sm:$0xff]  ;;  %vm627_vm0 = vcmask 130048   ;;  %v513_v35 = vld [vmem:[%s4842_s22 + $0x10] sm:$0xff]  ;;  %vm1095_vm1 = vcmask 31744   ;;  %vm1128_vm2 = vcmask 261120  }
  0xa3   : > { %s937_s20 = scalar_select %p936_p0, 1, 0  ;;  %3996 = vset.pattern.permute.xlu1 %v4487_v0  ;;  %3995 = vset.pattern.permute.xlu0 %v4487_v0  ;;  %v4856_v4 = vcombine.low %v488_v1, %v492_v2  ;;  %v4859_v6 = vcombine.low %v487_v3, %v491_v5  ;;  %v4863_v7 = vcombine.high %v488_v1, %v492_v2  ;;  %v495_v9 = vld [vmem:[%s4827_s14 + $0x40] sm:$0xff]  ;;  %v496_v12 = vld [vmem:[%s4827_s14 + $0x48] sm:$0xff]  ;;  %v517_v36 = vld [vmem:[%s4842_s22 + $0x30] sm:$0xff]  ;;  %vm1562_vm3 = vcmask 15360  }
  0xa4   : > { %v4867_v8 = vcombine.high %v487_v3, %v491_v5  ;;  %v499_v10 = vld [vmem:[%s4827_s14 + $0x60] sm:$0xff]  ;;  %v500_v13 = vld [vmem:[%s4827_s14 + $0x68] sm:$0xff]  ;;  %v514_v37 = vld [vmem:[%s4842_s22 + $0x18] sm:$0xff]  ;;  %v3436_v38 = vcombine.high %v513_v35, %v517_v36  ;;  %v3435_v42 = vcombine.low %v513_v35, %v517_v36  ;;  %s6002_s26 = sld [smem:[#allocation19_spill]]  ;;  %s3603_s7 = sshll.u32 %s4461_s15, 3 }
  0xa5   : > { %s938_s23 = scvt.s32.f32 %s937_s20  ;;  %1065 = vrot.lane.b32.xlu1 %v4856_v4, %s4488_s17  ;;  %1061 = vrot.lane.b32.xlu0 %v4859_v6, %s4488_s17  ;;  %v932_v11 = vld [vmem:[%s4835_s28] sm:$0xf]  ;;  %v933_v14 = vld [vmem:[%s4835_s28 + $0x4] sm:$0xf]  ;;  %v4880_v17 = vcombine.low %v495_v9, %v499_v10  ;;  %v4887_v21 = vcombine.high %v495_v9, %v499_v10  ;;  %v4897_v31 = vcombine.low %v496_v12, %v500_v13  ;;  %s5997_s20 = sld [smem:[#allocation29_spill]] }
  0xa6   : > { %v934_v15 = vld [vmem:[%s4835_s28 + $0x8] sm:$0xf]  ;;  %v511_v16 = vld [vmem:[%s4842_s22] sm:$0xff]  ;;  %v935_v22 = vld [vmem:[%s4835_s28 + $0xc] sm:$0xf]  ;;  %v4918_v46 = vcombine.high %v496_v12, %v500_v13  ;;  %s4489_s28 = smov 2  }
  0xa7   : > { %s941_s27 = sshrl.u32 %s938_s23, 16  ;;  %p940_p12 = scmp.ne.f32.partialorder %s938_s23, %s938_s23  ;;  %v515_v18 = vld [vmem:[%s4842_s22 + $0x20] sm:$0xff]  ;;  %v512_v19 = vld [vmem:[%s4842_s22 + $0x8] sm:$0xff]  ;;  %v518_v39 = vld [vmem:[%s4842_s22 + $0x38] sm:$0xff] }
  0xa8   : > { %s942_s3 = sand.u32 1, %s941_s27  ;;  %v516_v20 = vld [vmem:[%s4842_s22 + $0x28] sm:$0xff]  ;;  %v3432_v23 = vcombine.high %v511_v16, %v515_v18  ;;  %v3431_v24 = vcombine.low %v511_v16, %v515_v18  ;;  %v4893_v30 = vld [vmem:[%s5931_s5] sm:$0xff]   ;;  %v489_v40 = vld [vmem:[%s4827_s14 + $0x10] sm:$0xff]  ;;  %v3438_v43 = vcombine.high %v514_v37, %v518_v39  ;;  %v3437_v45 = vcombine.low %v514_v37, %v518_v39  ;;  %s6001_s22 = sld [smem:[#allocation31_spill]] }
  0xa9   : > { %s943_s1 = sadd.s32 32767, %s942_s3  ;;  %1067 = vrot.lane.b32.xlu1 %v4863_v7, %s4488_s17  ;;  %1063 = vrot.lane.b32.xlu0 %v4867_v8, %s4488_s17  ;;  %v3434_v25 = vcombine.high %v512_v19, %v516_v20  ;;  %v3433_v27 = vcombine.low %v512_v19, %v516_v20  ;;  %v493_v41 = vld [vmem:[%s4827_s14 + $0x30] sm:$0xff]  ;;  %v3998_v47 = vld [vmem:[%s5931_s5 + $0x8] sm:$0xff]   ;;  %p6004_p10 = scmp.ne.s32.totalorder %s5987_s4, 0 }
  0xaa   : > { %s944_s24 = sadd.s32 %s943_s1, %s938_s23  ;;  %640 = vmatprep.subr.bf16.mxu0 %v3432_v23  ;;  %v490_v48 = vld [vmem:[%s4827_s14 + $0x18] sm:$0xff]  ;;  %v4930_v50 = vcombine.high %v489_v40, %v493_v41  ;;  %v4934_v51 = vcombine.low %v489_v40, %v493_v41  ;;  %v497_v52 = vld [vmem:[%s4827_s14 + $0x50] sm:$0xff]  ;;  %s3604_s16 = sshll.u32 %s6002_s26, 7 }
  0xab   : > { %s945_s30 = sand.u32 4294901760, %s944_s24  ;;  %641 = vmatpush1.bf16.msra.mxu0 %v3431_v24  ;;  %713 = vmatprep.subr.bf16.mxu1 %v3434_v25  ;;  %v494_v49 = vld [vmem:[%s4827_s14 + $0x38] sm:$0xff]  ;;  %v501_v53 = vld [vmem:[%s4827_s14 + $0x70] sm:$0xff]  ;;  %v5050_v24 = vld [vmem:[%s5997_s20] sm:$0xff]   ;;  %s5756_s0 = sadd.s32 %s3604_s16, %s3603_s7 }
  0xac   : > { %s6035_s30 = smov (%p940_p12, %s945_s30), 2143289344  ;;  %714 = vmatpush1.bf16.msra.mxu1 %v3433_v27  ;;  %786 = vmatprep.subr.bf16.mxu0 %v3436_v38  ;;  %v4941_v54 = vcombine.high %v490_v48, %v494_v49  ;;  %v4946_v55 = vcombine.low %v490_v48, %v494_v49  ;;  %v3999_v56 = vld [vmem:[%s5931_s5 + $0x10] sm:$0xff]   ;;  %v4955_v57 = vcombine.high %v497_v52, %v501_v53  ;;  %v498_v59 = vld [vmem:[%s4827_s14 + $0x58] sm:$0xff]  ;;  %s3605_s15 = sshll.u32 %s5756_s0, 7 }
  0xad   : > { %s948_s8 = sshrl.u32 %s6035_s30, 16  ;;  %1079 = vrot.lane.b32.xlu1 %v4880_v17, %s4488_s17  ;;  %1081 = vrot.lane.b32.xlu0 %v4887_v21, %s4488_s17  ;;  %v4959_v58 = vcombine.low %v497_v52, %v501_v53  ;;  %v502_v60 = vld [vmem:[%s4827_s14 + $0x78] sm:$0xff]  ;;  %s3425_s30 = sshll.u32 %s4823_s19, 8 }
  0xae   : > { %s949_s9 = sshll.u32 %s948_s8, 16  ;;  %3439 = vmatmul.mubr.msk.bf16.vlgmr.msra.gmra.mrb[0].mxu0 %vm627_vm0, %v4893_v30  ;;  %859 = vmatprep.subr.bf16.mxu1 %v3438_v43  ;;  %v4966_v61 = vcombine.high %v498_v59, %v502_v60  ;;  %v4971_v62 = vcombine.low %v498_v59, %v502_v60  ;;  %v4000_v63 = vld [vmem:[%s5931_s5 + $0x18] sm:$0xff]   ;;  %s3194_s23 = scalar_lea.sflag [#allocation10], %s4823_s19 }
  0xaf   : > { %s950_s11 = sor.u32 %s949_s9, %s948_s8  ;;  %682 = vmatprep.mubr.bf16.mxu0 %v4487_v0  ;;  %3443 = vmatmul.mubr.msk.bf16.vlgmr.msra.gmra.mrb[0].mxu1 %vm627_vm0, %v4893_v30  ;;  %v4004_v53 = vld [vmem:[%s5997_s20 + $0x18] sm:$0xff]   ;;  %s5998_s9 = sld [smem:[#allocation30_spill]] }
  0xb0   : > { %v951_v26 = vstv %s950_s11  ;;  %755 = vmatprep.mubr.bf16.mxu1 %v4487_v0  ;;  %787 = vmatpush1.bf16.msra.mxu0 %v3435_v42  ;;  %v4003_v42 = vld [vmem:[%s5997_s20 + $0x10] sm:$0xff]   ;;  %s5999_s11 = sld [smem:[#allocation32_spill]]  ;;  %s5658_s8 = scalar_lea.vmem [#allocation9], %s3425_s30 }
  0xb1   : > { %v953_v28 = vmul.bf16 %v951_v26, %v932_v11  ;;  %v954_v29 = vmul.bf16 %v951_v26, %v933_v14  ;;  %v955_v32 = vmul.bf16 %v951_v26, %v934_v15  ;;  %v956_v33 = vmul.bf16 %v951_v26, %v935_v22  ;;  %1083 = vrot.lane.b32.xlu1 %v4897_v31, %s4488_s17  ;;  %s3227_s12 = sshll.u32 %s5658_s8, 4  ;;  %s4490_s3 = smov [#allocation9]   ;;  %s5781_s12 = int_to_ptr.vmem [resolvable:$true] %s3227_s12 }
  0xb2   : > { %860 = vmatpush1.bf16.msra.mxu1 %v3437_v45  ;;  %s4315_s27 = scalar_lea.vmem %s5781_s12, 4096  ;;  %s4319_s1 = sshll.u32 %s4490_s3, 4  ;;  %s4320_s1 = int_to_ptr.vmem [resolvable:$false] %s4319_s1 }
  0xb3   : > { %v4901_v34 = vcombine.low %v953_v28, %v954_v29  ;;  %v4913_v44 = vcombine.low %v955_v32, %v956_v33  ;;  %p4316_p4 = scmp.ne.s32.totalorder %s5781_s12, %s4315_s27  ;;  %s4321_s24 = scalar_lea.vmem %s4320_s1, 8192 }
  0xb4   : > { %p4322_p9 = scmp.lt.s32.totalorder %s5781_s12, %s4320_s1  ;;  %p4323_p11 = scmp.lt.s32.totalorder %s4321_s24, %s4315_s27 }
  0xb5   : > { %1059 = vrot.lane.b32.xlu0 %v4901_v34, %s4488_s17  ;;  %1077 = vrot.lane.b32.xlu1 %v4913_v44, %s4488_s17  ;;  %p4317_p5 = pnand %p4316_p4, %p6004_p10 }
  0xb6   : > { %3440 = vmatmul.mubr.msk.bf16.gmra.mrb[4].mxu0 %vm627_vm0, %v3998_v47  ;;  %s6000_s29 = smov %s5999_s11  ;;  %p4324_p13 = por %p4323_p11, %p4322_p9 }
  0xb7   : > { %692 = vmatprep.mubr.bf16.mxu0 %v4487_v0  ;;  %3444 = vmatmul.mubr.msk.bf16.gmra.mrb[4].mxu1 %vm627_vm0, %v3998_v47  ;;  %p4318_p8 = pneg %p4317_p5 }
  0xb8   : > { %765 = vmatprep.mubr.bf16.mxu1 %v4487_v0 }
  0xb9   : > { %1085 = vrot.lane.b32.xlu0 %v4918_v46, %s4488_s17  ;;  %1071 = vrot.lane.b32.xlu1 %v4930_v50, %s4488_s17  ;;  %p4325_p1 = pnand %p4324_p13, %p4318_p8 }
  0xbd   : > { %1069 = vrot.lane.b32.xlu0 %v4934_v51, %s4488_s17  ;;  %1075 = vrot.lane.b32.xlu1 %v4941_v54, %s4488_s17 }
  0xbe   : > { %3441 = vmatmul.mubr.msk.bf16.gmra.mrb[8].mxu0 %vm627_vm0, %v3999_v56 }
  0xbf   : > { %702 = vmatprep.mubr.bf16.mxu0 %v4487_v0  ;;  %3445 = vmatmul.mubr.msk.bf16.gmra.mrb[8].mxu1 %vm627_vm0, %v3999_v56 }
  0xc0   : > { %775 = vmatprep.mubr.bf16.mxu1 %v4487_v0 }
  0xc1   : > { %1073 = vrot.lane.b32.xlu0 %v4946_v55, %s4488_s17  ;;  %1089 = vrot.lane.b32.xlu1 %v4955_v57, %s4488_s17 }
  0xc5   : > { %1087 = vrot.lane.b32.xlu0 %v4959_v58, %s4488_s17  ;;  %1093 = vrot.lane.b32.xlu1 %v4966_v61, %s4488_s17 }
  0xc6   : > { %3442 = vmatmul.mubr.msk.bf16.gmra.mrb[12].mxu0 %vm627_vm0, %v4000_v63 }
  0xc7   : > { %818 = vmatprep.mubr.bf16.mxu0 %v4487_v0  ;;  %3446 = vmatmul.mubr.msk.bf16.gmra.mrb[12].mxu1 %vm627_vm0, %v4000_v63 }
  0xc8   : > { %891 = vmatprep.mubr.bf16.mxu1 %v4487_v0 }
  0xc9   : > { %1091 = vrot.lane.b32.xlu0 %v4971_v62, %s4488_s17  ;;  %1530 = vrot.lane.b32.xlu1 %v4867_v8, %s4489_s28 }
  0xcd   : > { %1528 = vrot.lane.b32.xlu0 %v4859_v6, %s4489_s28  ;;  %1534 = vrot.lane.b32.xlu1 %v4863_v7, %s4489_s28 }
  0xce   : > { %3447 = vmatmul.mubr.msk.bf16.vlgmr.msra.gmra.mrb[16].mxu0 %vm627_vm0, %v4893_v30 }
  0xcf   : > { %828 = vmatprep.mubr.bf16.mxu0 %v4487_v0  ;;  %3451 = vmatmul.mubr.msk.bf16.vlgmr.msra.gmra.mrb[16].mxu1 %vm627_vm0, %v4893_v30 }
  0xd0   : > { %901 = vmatprep.mubr.bf16.mxu1 %v4487_v0 }
  0xd1   : > { %1532 = vrot.lane.b32.xlu0 %v4856_v4, %s4489_s28  ;;  %1546 = vrot.lane.b32.xlu1 %v4880_v17, %s4489_s28 }
  0xd5   : > { %1526 = vrot.lane.b32.xlu0 %v4901_v34, %s4489_s28  ;;  %1550 = vrot.lane.b32.xlu1 %v4897_v31, %s4489_s28  ;;  %v5065_v34 = vld [vmem:[%s5997_s20 + $0x8] sm:$0xff]  }
  0xd6   : > { %3448 = vmatmul.mubr.msk.bf16.gmra.mrb[20].mxu0 %vm627_vm0, %v3998_v47 }
  0xd7   : > { %838 = vmatprep.mubr.bf16.mxu0 %v4487_v0  ;;  %3452 = vmatmul.mubr.msk.bf16.gmra.mrb[20].mxu1 %vm627_vm0, %v3998_v47 }
  0xd8   : > { %911 = vmatprep.mubr.bf16.mxu1 %v4487_v0 }
  0xd9   : > { %1548 = vrot.lane.b32.xlu0 %v4887_v21, %s4489_s28  ;;  %1544 = vrot.lane.b32.xlu1 %v4913_v44, %s4489_s28 }
  0xdd   : > { %1552 = vrot.lane.b32.xlu0 %v4918_v46, %s4489_s28  ;;  %1538 = vrot.lane.b32.xlu1 %v4930_v50, %s4489_s28 }
  0xde   : > { %3449 = vmatmul.mubr.msk.bf16.gmra.mrb[24].mxu0 %vm627_vm0, %v3999_v56 }
  0xdf   : > { %848 = vmatprep.mubr.bf16.mxu0 %v4487_v0  ;;  %3453 = vmatmul.mubr.msk.bf16.gmra.mrb[24].mxu1 %vm627_vm0, %v3999_v56 }
  0xe0   : > { %921 = vmatprep.mubr.bf16.mxu1 %v4487_v0 }
  0xe1   : > { %1536 = vrot.lane.b32.xlu0 %v4934_v51, %s4489_s28  ;;  %1542 = vrot.lane.b32.xlu1 %v4941_v54, %s4489_s28 }
  0xe5   : > { %1540 = vrot.lane.b32.xlu0 %v4946_v55, %s4489_s28  ;;  %1556 = vrot.lane.b32.xlu1 %v4955_v57, %s4489_s28 }
  0xe6   : > { %3450 = vmatmul.mubr.msk.bf16.gmra.mrb[28].mxu0 %vm627_vm0, %v4000_v63 }
  0xe7   : > { %1173 = vmatprep.mubr.bf16.mxu0 %v4487_v0  ;;  %3454 = vmatmul.mubr.msk.bf16.gmra.mrb[28].mxu1 %vm627_vm0, %v4000_v63 }
  0xe8   : > { %1246 = vmatprep.mubr.bf16.mxu1 %v4487_v0 }
  0xe9   : > { %1554 = vrot.lane.b32.xlu0 %v4959_v58, %s4489_s28  ;;  %1560 = vrot.lane.b32.xlu1 %v4966_v61, %s4489_s28 }
  0xed   : > { %1558 = vrot.lane.b32.xlu0 %v4971_v62, %s4489_s28  ;;  %s6003_s28 = sld [smem:[#allocation34_spill]] }
  0xf3   : > { %s5779_s25 = scalar_lea.hbm %s6003_s28, %s3605_s15 }
 0x117   : > { %v1066_v1 = vpop.permute.xlu1 %1065  ;;  %v1062_v2 = vpop.permute.xlu0 %1061 }
 0x11b   : > { %v1068_v3 = vpop.permute.xlu1 %1067  ;;  %v1064_v5 = vpop.permute.xlu0 %1063 }
 0x11c   : > { %v1099_v9 = vsel %vm1095_vm1, %v1066_v1, %v1068_v3  ;;  %v1098_v10 = vsel %vm1095_vm1, %v1064_v5, %v1066_v1  ;;  %v1097_v11 = vsel %vm1095_vm1, %v1062_v2, %v1064_v5 }
 0x11d   : > { %1214 = vmatprep.subr.bf16.mxu1 %v1099_v9  ;;  %1141 = vmatprep.subr.bf16.mxu0 %v1097_v11 }
 0x11e   : > { %1215 = vmatpush1.bf16.msra.mxu1 %v1098_v10 }
 0x11f   : > { %v1080_v12 = vpop.permute.xlu1 %1079  ;;  %v1082_v13 = vpop.permute.xlu0 %1081 }
 0x120   : > { %v1105_v18 = vsel %vm1095_vm1, %v1080_v12, %v1082_v13 }
 0x123   : > { %v1084_v14 = vpop.permute.xlu1 %1083 }
 0x124   : > { %v1106_v25 = vsel %vm1095_vm1, %v1082_v13, %v1084_v14 }
 0x127   : > { %v1060_v15 = vpop.permute.xlu0 %1059  ;;  %v1078_v19 = vpop.permute.xlu1 %1077 }
 0x128   : > { %v1096_v16 = vsel %vm1095_vm1, %v1060_v15, %v1062_v2  ;;  %v1104_v20 = vsel %vm1095_vm1, %v1078_v19, %v1080_v12 }
 0x129   : > { %1142 = vmatpush1.bf16.msra.mxu0 %v1096_v16 }
 0x12a   : > { %1143 = vmatprep.subr.bf16.mxu0 %v1105_v18 }
 0x12b   : > { %v1086_v22 = vpop.permute.xlu0 %1085  ;;  %v1072_v26 = vpop.permute.xlu1 %1071 }
 0x12c   : > { %v1107_v23 = vsel %vm1095_vm1, %v1084_v14, %v1086_v22 }
 0x12d   : > { %1144 = vmatpush1.bf16.msra.mxu0 %v1104_v20  ;;  %1216 = vmatprep.subr.bf16.mxu1 %v1107_v23  ;;  %v523_v23 = vld [vmem:[%s5998_s9 + $0x20] sm:$0xff] }
 0x12e   : > { %1217 = vmatpush1.bf16.msra.mxu1 %v1106_v25  ;;  %549 = vperm.xlu0 %3995, %v523_v23  }
 0x12f   : > { %v1070_v27 = vpop.permute.xlu0 %1069  ;;  %v1076_v30 = vpop.permute.xlu1 %1075 }
 0x130   : > { %v1100_v28 = vsel %vm1095_vm1, %v1068_v3, %v1070_v27  ;;  %3477 = vmatmul.mubr.msk.bf16.vlgmr.msra.gmra.mrb[0].mxu0 %vm1128_vm2, %v5050_v24  ;;  %v1101_v29 = vsel %vm1095_vm1, %v1070_v27, %v1072_v26  ;;  %v5140_v27 = vld [vmem:[%s5997_s20 + $0x20] sm:$0xff]  }
 0x131   : > { %3481 = vmatmul.mubr.msk.bf16.vlgmr.msra.gmra.mrb[0].mxu1 %vm1128_vm2, %v5050_v24  ;;  %1287 = vmatprep.subr.bf16.mxu0 %v1101_v29 }
 0x132   : > { %1288 = vmatpush1.bf16.msra.mxu0 %v1100_v28  ;;  %1183 = vmatprep.mubr.bf16.mxu0 %v4487_v0  ;;  %v526_v28 = vld [vmem:[%s5998_s9 + $0x38] sm:$0xff] }
 0x133   : > { %v1074_v32 = vpop.permute.xlu0 %1073  ;;  %1256 = vmatprep.mubr.bf16.mxu1 %v4487_v0  ;;  %v1090_v36 = vpop.permute.xlu1 %1089  ;;  %564 = vperm.xlu0 %3995, %v526_v28  }
 0x134   : > { %v1102_v33 = vsel %vm1095_vm1, %v1072_v26, %v1074_v32  ;;  %v1103_v35 = vsel %vm1095_vm1, %v1074_v32, %v1076_v30  ;;  %v525_v26 = vld [vmem:[%s5998_s9 + $0x30] sm:$0xff] }
 0x135   : > { %1360 = vmatprep.subr.bf16.mxu1 %v1103_v35 }
 0x136   : > { %1361 = vmatpush1.bf16.msra.mxu1 %v1102_v33 }
 0x137   : > { %v1088_v37 = vpop.permute.xlu0 %1087  ;;  %v1094_v40 = vpop.permute.xlu1 %1093 }
 0x138   : > { %v1108_v38 = vsel %vm1095_vm1, %v1086_v22, %v1088_v37  ;;  %3478 = vmatmul.mubr.msk.bf16.gmra.mrb[4].mxu0 %vm1128_vm2, %v5065_v34  ;;  %v1109_v39 = vsel %vm1095_vm1, %v1088_v37, %v1090_v36  ;;  %v524_v22 = vld [vmem:[%s5998_s9 + $0x28] sm:$0xff] }
 0x139   : > { %3482 = vmatmul.mubr.msk.bf16.gmra.mrb[4].mxu1 %vm1128_vm2, %v5065_v34  ;;  %1289 = vmatprep.subr.bf16.mxu0 %v1109_v39  ;;  %v520_v37 = vld [vmem:[%s5998_s9 + $0x8] sm:$0xff] }
 0x13a   : > { %1290 = vmatpush1.bf16.msra.mxu0 %v1108_v38  ;;  %1193 = vmatprep.mubr.bf16.mxu0 %v4487_v0  ;;  %v4006_v39 = vld [vmem:[%s5997_s20 + $0x28] sm:$0xff]  }
 0x13b   : > { %1266 = vmatprep.mubr.bf16.mxu1 %v4487_v0  ;;  %v1092_v41 = vpop.permute.xlu0 %1091  ;;  %v1531_v45 = vpop.permute.xlu1 %1530  ;;  %554 = vperm.xlu1 %3996, %v524_v22  }
 0x13c   : > { %v1110_v43 = vsel %vm1095_vm1, %v1090_v36, %v1092_v41  ;;  %v1111_v44 = vsel %vm1095_vm1, %v1092_v41, %v1094_v40  ;;  %v519_v36 = vld [vmem:[%s5998_s9] sm:$0xff]  ;;  %534 = vperm.xlu0 %3995, %v520_v37   ;;  %v521_v41 = vld [vmem:[%s5998_s9 + $0x10] sm:$0xff] }
 0x13d   : > { %1362 = vmatprep.subr.bf16.mxu1 %v1111_v44  ;;  %v2662_v44 = vld [vmem:[%s6000_s29 + $0x30] sm:$0xff] }
 0x13e   : > { %1363 = vmatpush1.bf16.msra.mxu1 %v1110_v43  ;;  %v2661_v43 = vld [vmem:[%s6000_s29 + $0x28] sm:$0xff] }
 0x13f   : > { %v1529_v47 = vpop.permute.xlu0 %1528  ;;  %v5086_v49 = vpop.permute.xlu1 %1534  ;;  %559 = vperm.xlu1 %3996, %v525_v26  }
 0x140   : > { %3479 = vmatmul.mubr.msk.bf16.gmra.mrb[8].mxu0 %vm1128_vm2, %v4003_v42  ;;  %v1564_v48 = vsel %vm1562_vm3, %v1529_v47, %v1531_v45 }
 0x141   : > { %3483 = vmatmul.mubr.msk.bf16.gmra.mrb[8].mxu1 %vm1128_vm2, %v4003_v42  ;;  %1203 = vmatprep.mubr.bf16.mxu0 %v4487_v0 }
 0x142   : > { %1276 = vmatprep.mubr.bf16.mxu1 %v4487_v0  ;;  %1607 = vmatprep.subr.bf16.mxu0 %v1564_v48  ;;  %v4008_v48 = vld [vmem:[%s5997_s20 + $0x38] sm:$0xff]  }
 0x143   : > { %v1533_v52 = vpop.permute.xlu0 %1532  ;;  %v1547_v59 = vpop.permute.xlu1 %1546  ;;  %529 = vperm.xlu1 %3996, %v519_v36  }
 0x144   : > { %v1566_v56 = vsel %vm1562_vm3, %v1533_v52, %v5086_v49  ;;  %v1565_v9 = vsel %vm1562_vm3, %v1531_v45, %v1533_v52  ;;  %v2663_v45 = vld [vmem:[%s6000_s29 + $0x38] sm:$0xff]  ;;  %v2658_v52 = vld [vmem:[%s6000_s29 + $0x10] sm:$0xff] }
 0x145   : > { %1680 = vmatprep.subr.bf16.mxu1 %v1566_v56 }
 0x147   : > { %v1527_v60 = vpop.permute.xlu0 %1526  ;;  %v1551_v63 = vpop.permute.xlu1 %1550  ;;  %539 = vperm.xlu1 %3996, %v521_v41  }
 0x148   : > { %3480 = vmatmul.mubr.msk.bf16.gmra.mrb[12].mxu0 %vm1128_vm2, %v4004_v53  ;;  %v1563_v3 = vsel %vm1562_vm3, %v1527_v60, %v1529_v47  ;;  %v2656_v47 = vld [vmem:[%s6000_s29] sm:$0xff] }
 0x149   : > { %3484 = vmatmul.mubr.msk.bf16.gmra.mrb[12].mxu1 %vm1128_vm2, %v4004_v53  ;;  %1319 = vmatprep.mubr.bf16.mxu0 %v4487_v0 }
 0x14a   : > { %1392 = vmatprep.mubr.bf16.mxu1 %v4487_v0 }
 0x14b   : > { %v1549_v1 = vpop.permute.xlu0 %1548  ;;  %v1545_v2 = vpop.permute.xlu1 %1544 }
 0x14c   : > { %v1572_v10 = vsel %vm1562_vm3, %v1547_v59, %v1549_v1  ;;  %v1571_v14 = vsel %vm1562_vm3, %v1545_v2, %v1547_v59  ;;  %v1573_v15 = vsel %vm1562_vm3, %v1549_v1, %v1551_v63 }
 0x14f   : > { %v5098_v5 = vpop.permute.xlu0 %1552  ;;  %v1539_v12 = vpop.permute.xlu1 %1538 }
 0x150   : > { %3485 = vmatmul.mubr.msk.bf16.vlgmr.msra.gmra.mrb[16].mxu0 %vm1128_vm2, %v5050_v24  ;;  %v1574_v11 = vsel %vm1562_vm3, %v1551_v63, %v5098_v5 }
 0x151   : > { %3489 = vmatmul.mubr.msk.bf16.vlgmr.msra.gmra.mrb[16].mxu1 %vm1128_vm2, %v5050_v24  ;;  %1329 = vmatprep.mubr.bf16.mxu0 %v4487_v0 }
 0x152   : > { %1402 = vmatprep.mubr.bf16.mxu1 %v4487_v0  ;;  %1608 = vmatpush1.bf16.msra.mxu0 %v1563_v3 }
 0x153   : > { %1681 = vmatpush1.bf16.msra.mxu1 %v1565_v9  ;;  %v1537_v13 = vpop.permute.xlu0 %1536  ;;  %1609 = vmatprep.subr.bf16.mxu0 %v1572_v10  ;;  %v1543_v19 = vpop.permute.xlu1 %1542 }
 0x154   : > { %1682 = vmatprep.subr.bf16.mxu1 %v1574_v11  ;;  %v1568_v16 = vsel %vm1562_vm3, %v1537_v13, %v1539_v12  ;;  %v1567_v33 = vsel %vm1562_vm3, %v5086_v49, %v1537_v13  ;;  %v2657_v49 = vld [vmem:[%s6000_s29 + $0x8] sm:$0xff] }
 0x156   : > { %1610 = vmatpush1.bf16.msra.mxu0 %v1571_v14 }
 0x157   : > { %v1541_v18 = vpop.permute.xlu0 %1540  ;;  %1683 = vmatpush1.bf16.msra.mxu1 %v1573_v15  ;;  %1753 = vmatprep.subr.bf16.mxu0 %v1568_v16  ;;  %v1557_v25 = vpop.permute.xlu1 %1556 }
 0x158   : > { %3486 = vmatmul.mubr.msk.bf16.gmra.mrb[20].mxu0 %vm1128_vm2, %v5065_v34  ;;  %v1570_v20 = vsel %vm1562_vm3, %v1541_v18, %v1543_v19 }
 0x159   : > { %3490 = vmatmul.mubr.msk.bf16.gmra.mrb[20].mxu1 %vm1128_vm2, %v5065_v34  ;;  %1339 = vmatprep.mubr.bf16.mxu0 %v4487_v0  ;;  %v1569_v34 = vsel %vm1562_vm3, %v1539_v12, %v1541_v18 }
 0x15a   : > { %1412 = vmatprep.mubr.bf16.mxu1 %v4487_v0  ;;  %1826 = vmatprep.subr.bf16.mxu1 %v1570_v20 }
 0x15b   : > { %v1555_v24 = vpop.permute.xlu0 %1554  ;;  %v1561_v29 = vpop.permute.xlu1 %1560 }
 0x15c   : > { %v1576_v32 = vsel %vm1562_vm3, %v1555_v24, %v1557_v25  ;;  %v1575_v38 = vsel %vm1562_vm3, %v5098_v5, %v1555_v24 }
 0x15f   : > { %v1559_v30 = vpop.permute.xlu0 %1558 }
 0x160   : > { %3487 = vmatmul.mubr.msk.bf16.gmra.mrb[24].mxu0 %vm1128_vm2, %v4003_v42  ;;  %v1578_v35 = vsel %vm1562_vm3, %v1559_v30, %v1561_v29  ;;  %v1577_v40 = vsel %vm1562_vm3, %v1557_v25, %v1559_v30 }
 0x161   : > { %3491 = vmatmul.mubr.msk.bf16.gmra.mrb[24].mxu1 %vm1128_vm2, %v4003_v42  ;;  %1349 = vmatprep.mubr.bf16.mxu0 %v4487_v0  ;;  %v522_v42 = vld [vmem:[%s5998_s9 + $0x18] sm:$0xff] }
 0x162   : > { %1422 = vmatprep.mubr.bf16.mxu1 %v4487_v0  ;;  %544 = vperm.xlu0 %3995, %v522_v42  }
 0x166   : > { %2691 = vperm.xlu0 %3995, %v2661_v43  }
 0x168   : > { %3488 = vmatmul.mubr.msk.bf16.gmra.mrb[28].mxu0 %vm1128_vm2, %v4004_v53 }
 0x169   : > { %3492 = vmatmul.mubr.msk.bf16.gmra.mrb[28].mxu1 %vm1128_vm2, %v4004_v53  ;;  %1639 = vmatprep.mubr.bf16.mxu0 %v4487_v0  ;;  %v2659_v53 = vld [vmem:[%s6000_s29 + $0x18] sm:$0xff] }
 0x16a   : > { %1712 = vmatprep.mubr.bf16.mxu1 %v4487_v0  ;;  %2701 = vperm.xlu0 %3995, %v2663_v45  }
 0x16e   : > { %2671 = vperm.xlu0 %3995, %v2657_v49  }
 0x170   : > { %3505 = vmatmul.mubr.msk.bf16.vlgmr.msra.gmra.mrb[0].mxu0 %vm1128_vm2, %v5140_v27 }
 0x171   : > { %1754 = vmatpush1.bf16.msra.mxu0 %v1567_v33  ;;  %3509 = vmatmul.mubr.msk.bf16.vlgmr.msra.gmra.mrb[0].mxu1 %vm1128_vm2, %v5140_v27 }
 0x172   : > { %1755 = vmatprep.subr.bf16.mxu0 %v1576_v32  ;;  %1649 = vmatprep.mubr.bf16.mxu0 %v4487_v0 }
 0x173   : > { %1722 = vmatprep.mubr.bf16.mxu1 %v4487_v0  ;;  %1827 = vmatpush1.bf16.msra.mxu1 %v1569_v34 }
 0x174   : > { %1828 = vmatprep.subr.bf16.mxu1 %v1578_v35  ;;  %2681 = vperm.xlu0 %3995, %v2659_v53  }
 0x175   : > { %1756 = vmatpush1.bf16.msra.mxu0 %v1575_v38 }
 0x176   : > { %2020 = vmatprep.subr.bf16.mxu0 %v4867_v8  ;;  %v2660_v8 = vld [vmem:[%s5999_s11 + $0x20] sm:$0xff]  ;;  %s5708_s11 = scalar_lea.vmem [#allocation8], %s3425_s30 }
 0x177   : > { %1829 = vmatpush1.bf16.msra.mxu1 %v1577_v40  ;;  %2686 = vperm.xlu1 %3996, %v2660_v8  }
 0x178   : > { %3506 = vmatmul.mubr.msk.bf16.gmra.mrb[4].mxu0 %vm1128_vm2, %v4006_v39  ;;  %2093 = vmatprep.subr.bf16.mxu1 %v4863_v7  ;;  %v4007_v7 = vld [vmem:[%s5997_s20 + $0x30] sm:$0xff]  }
 0x179   : > { %3510 = vmatmul.mubr.msk.bf16.gmra.mrb[4].mxu1 %vm1128_vm2, %v4006_v39  ;;  %1659 = vmatprep.mubr.bf16.mxu0 %v4487_v0 }
 0x17a   : > { %1732 = vmatprep.mubr.bf16.mxu1 %v4487_v0 }
 0x17b   : > { %2696 = vperm.xlu1 %3996, %v2662_v44  }
 0x17f   : > { %2666 = vperm.xlu1 %3996, %v2656_v47  }
 0x180   : > { %3507 = vmatmul.mubr.msk.bf16.gmra.mrb[8].mxu0 %vm1128_vm2, %v4007_v7 }
 0x181   : > { %3511 = vmatmul.mubr.msk.bf16.gmra.mrb[8].mxu1 %vm1128_vm2, %v4007_v7  ;;  %1669 = vmatprep.mubr.bf16.mxu0 %v4487_v0 }
 0x182   : > { %1742 = vmatprep.mubr.bf16.mxu1 %v4487_v0 }
 0x183   : > { %2676 = vperm.xlu1 %3996, %v2658_v52  }
 0x188   : > { %3508 = vmatmul.mubr.msk.bf16.gmra.mrb[12].mxu0 %vm1128_vm2, %v4008_v48 }
 0x189   : > { %3512 = vmatmul.mubr.msk.bf16.gmra.mrb[12].mxu1 %vm1128_vm2, %v4008_v48  ;;  %1785 = vmatprep.mubr.bf16.mxu0 %v4487_v0 }
 0x18a   : > { %1858 = vmatprep.mubr.bf16.mxu1 %v4487_v0 }
 0x190   : > { %3513 = vmatmul.mubr.msk.bf16.vlgmr.msra.gmra.mrb[16].mxu0 %vm1128_vm2, %v5140_v27 }
 0x191   : > { %3517 = vmatmul.mubr.msk.bf16.vlgmr.msra.gmra.mrb[16].mxu1 %vm1128_vm2, %v5140_v27  ;;  %1795 = vmatprep.mubr.bf16.mxu0 %v4487_v0 }
 0x192   : > { %1868 = vmatprep.mubr.bf16.mxu1 %v4487_v0  ;;  %2021 = vmatpush1.bf16.msra.mxu0 %v4859_v6  ;;  %v4010_v6 = vld [vmem:[%s5997_s20 + $0x48] sm:$0xff]  }
 0x193   : > { %2094 = vmatpush1.bf16.msra.mxu1 %v4856_v4  ;;  %2022 = vmatprep.subr.bf16.mxu0 %v4887_v21  ;;  %v4009_v4 = vld [vmem:[%s5997_s20 + $0x40] sm:$0xff]   ;;  %v4012_v21 = vld [vmem:[%s5997_s20 + $0x58] sm:$0xff]  }
 0x194   : > { %2095 = vmatprep.subr.bf16.mxu1 %v4918_v46 }
 0x196   : > { %2023 = vmatpush1.bf16.msra.mxu0 %v4880_v17  ;;  %v4011_v17 = vld [vmem:[%s5997_s20 + $0x50] sm:$0xff]  }
 0x197   : > { %2096 = vmatpush1.bf16.msra.mxu1 %v4897_v31  ;;  %2166 = vmatprep.subr.bf16.mxu0 %v4930_v50 }
 0x198   : > { %3514 = vmatmul.mubr.msk.bf16.gmra.mrb[20].mxu0 %vm1128_vm2, %v4006_v39  ;;  %2239 = vmatprep.subr.bf16.mxu1 %v4941_v54 }
 0x199   : > { %3518 = vmatmul.mubr.msk.bf16.gmra.mrb[20].mxu1 %vm1128_vm2, %v4006_v39  ;;  %1805 = vmatprep.mubr.bf16.mxu0 %v4487_v0 }
 0x19a   : > { %1878 = vmatprep.mubr.bf16.mxu1 %v4487_v0 }
 0x1a0   : > { %3515 = vmatmul.mubr.msk.bf16.gmra.mrb[24].mxu0 %vm1128_vm2, %v4007_v7 }
 0x1a1   : > { %3519 = vmatmul.mubr.msk.bf16.gmra.mrb[24].mxu1 %vm1128_vm2, %v4007_v7  ;;  %1815 = vmatprep.mubr.bf16.mxu0 %v4487_v0 }
 0x1a2   : > { %1888 = vmatprep.mubr.bf16.mxu1 %v4487_v0 }
 0x1a8   : > { %3516 = vmatmul.mubr.msk.bf16.gmra.mrb[28].mxu0 %vm1128_vm2, %v4008_v48 }
 0x1a9   : > { %3520 = vmatmul.mubr.msk.bf16.gmra.mrb[28].mxu1 %vm1128_vm2, %v4008_v48  ;;  %2052 = vmatprep.mubr.bf16.mxu0 %v4487_v0 }
 0x1aa   : > { %2125 = vmatprep.mubr.bf16.mxu1 %v4487_v0 }
 0x1ad   : > { %v5296_v46 = vpop.permute.xlu0 %549 }
 0x1b0   : > { %3533 = vmatmul.mubr.msk.bf16.vlgmr.msra.gmra.mrb[0].mxu0 %vm1128_vm2, %v4009_v4 }
 0x1b1   : > { %3537 = vmatmul.mubr.msk.bf16.vlgmr.msra.gmra.mrb[0].mxu1 %vm1128_vm2, %v4009_v4  ;;  %2062 = vmatprep.mubr.bf16.mxu0 %v4487_v0 }
 0x1b2   : > { %2135 = vmatprep.mubr.bf16.mxu1 %v4487_v0  ;;  %2167 = vmatpush1.bf16.msra.mxu0 %v4934_v51  ;;  %v5300_v51 = vpop.permute.xlu0 %564 }
 0x1b3   : > { %2240 = vmatpush1.bf16.msra.mxu1 %v4946_v55  ;;  %2168 = vmatprep.subr.bf16.mxu0 %v4955_v57 }
 0x1b4   : > { %2241 = vmatprep.subr.bf16.mxu1 %v4966_v61 }
 0x1b6   : > { %2169 = vmatpush1.bf16.msra.mxu0 %v4959_v58 }
 0x1b7   : > { %2242 = vmatpush1.bf16.msra.mxu1 %v4971_v62 }
 0x1b8   : > { %3534 = vmatmul.mubr.msk.bf16.gmra.mrb[4].mxu0 %vm1128_vm2, %v4010_v6 }
 0x1b9   : > { %3538 = vmatmul.mubr.msk.bf16.gmra.mrb[4].mxu1 %vm1128_vm2, %v4010_v6  ;;  %2072 = vmatprep.mubr.bf16.mxu0 %v4487_v0 }
 0x1ba   : > { %2145 = vmatprep.mubr.bf16.mxu1 %v4487_v0  ;;  %v5294_v31 = vpop.permute.xlu1 %554 }
 0x1bb   : > { %v5306_v1 = vpop.permute.xlu0 %534 }
 0x1be   : > { %v5298_v50 = vpop.permute.xlu1 %559 }
 0x1c0   : > { %3535 = vmatmul.mubr.msk.bf16.gmra.mrb[8].mxu0 %vm1128_vm2, %v4011_v17 }
 0x1c1   : > { %3539 = vmatmul.mubr.msk.bf16.gmra.mrb[8].mxu1 %vm1128_vm2, %v4011_v17  ;;  %2082 = vmatprep.mubr.bf16.mxu0 %v4487_v0 }
 0x1c2   : > { %2155 = vmatprep.mubr.bf16.mxu1 %v4487_v0  ;;  %v5302_v54 = vpop.permute.xlu1 %529 }
 0x1c6   : > { %v5312_v11 = vpop.permute.xlu1 %539 }
 0x1c8   : > { %3536 = vmatmul.mubr.msk.bf16.gmra.mrb[12].mxu0 %vm1128_vm2, %v4012_v21 }
 0x1c9   : > { %3540 = vmatmul.mubr.msk.bf16.gmra.mrb[12].mxu1 %vm1128_vm2, %v4012_v21  ;;  %2198 = vmatprep.mubr.bf16.mxu0 %v4487_v0 }
 0x1ca   : > { %2271 = vmatprep.mubr.bf16.mxu1 %v4487_v0 }
 0x1d0   : > { %3541 = vmatmul.mubr.msk.bf16.vlgmr.msra.gmra.mrb[16].mxu0 %vm1128_vm2, %v4009_v4 }
 0x1d1   : > { %3545 = vmatmul.mubr.msk.bf16.vlgmr.msra.gmra.mrb[16].mxu1 %vm1128_vm2, %v4009_v4  ;;  %2208 = vmatprep.mubr.bf16.mxu0 %v4487_v0 }
 0x1d2   : > { %2281 = vmatprep.mubr.bf16.mxu1 %v4487_v0 }
 0x1d8   : > { %3542 = vmatmul.mubr.msk.bf16.gmra.mrb[20].mxu0 %vm1128_vm2, %v4010_v6 }
 0x1d9   : > { %3546 = vmatmul.mubr.msk.bf16.gmra.mrb[20].mxu1 %vm1128_vm2, %v4010_v6  ;;  %2218 = vmatprep.mubr.bf16.mxu0 %v4487_v0 }
 0x1da   : > { %2291 = vmatprep.mubr.bf16.mxu1 %v4487_v0 }
 0x1e0   : > { %3543 = vmatmul.mubr.msk.bf16.gmra.mrb[24].mxu0 %vm1128_vm2, %v4011_v17 }
 0x1e1   : > { %3547 = vmatmul.mubr.msk.bf16.gmra.mrb[24].mxu1 %vm1128_vm2, %v4011_v17  ;;  %2228 = vmatprep.mubr.bf16.mxu0 %v4487_v0  ;;  %v5324_v26 = vpop.permute.xlu0 %544 }
 0x1e2   : > { %2301 = vmatprep.mubr.bf16.mxu1 %v4487_v0 }
 0x1e8   : > { %3544 = vmatmul.mubr.msk.bf16.gmra.mrb[28].mxu0 %vm1128_vm2, %v4012_v21 }
 0x1e9   : > { %3548 = vmatmul.mubr.msk.bf16.gmra.mrb[28].mxu1 %vm1128_vm2, %v4012_v21  ;;  %2768 = vmatprep.mubr.bf16.mxu0 %v4487_v0 }
 0x1ea   : > { %2841 = vmatprep.mubr.bf16.mxu1 %v4487_v0 }
 0x283   : > { %v2054_v55 = vpop.f32.mrb[0].mxu0 }
 0x284   : > { %v2056_v57 = vpop.f32.mrb[1].mxu0  ;;  %v2127_v58 = vpop.f32.mrb[0].mxu1  ;;  %v3611_v56 = vadd.f32 %v2054_v55, %v5302_v54 }
 0x285   : > { %v2058_v61 = vpop.f32.mrb[2].mxu0  ;;  %v2129_v62 = vpop.f32.mrb[1].mxu1  ;;  %v3612_v63 = vadd.f32 %v2056_v57, %v5302_v54  ;;  %v3627_v3 = vadd.f32 %v2127_v58, %v5302_v54 }
 0x286   : > { %v2060_v59 = vpop.f32.mrb[3].mxu0  ;;  %v2131_v60 = vpop.f32.mrb[2].mxu1  ;;  %v3628_v5 = vadd.f32 %v2129_v62, %v5302_v54  ;;  %4017 = vtanh.f32 %v3611_v56  ;;  %v3613_v9 = vadd.f32 %v2058_v61, %v5306_v1 }
 0x287   : > { %v2133_v2 = vpop.f32.mrb[3].mxu1  ;;  %4019 = vtanh.f32 %v3612_v63  ;;  %v3614_v10 = vadd.f32 %v2060_v59, %v5306_v1  ;;  %v3629_v13 = vadd.f32 %v2131_v60, %v5306_v1 }
 0x288   : > { %4021 = vtanh.f32 %v3627_v3  ;;  %v3630_v16 = vadd.f32 %v2133_v2, %v5306_v1 }
 0x289   : > { %4023 = vtanh.f32 %v3628_v5 }
 0x28a   : > { %4025 = vtanh.f32 %v3613_v9 }
 0x28b   : > { %v2064_v12 = vpop.f32.mrb[4].mxu0  ;;  %4027 = vtanh.f32 %v3614_v10 }
 0x28c   : > { %v2066_v14 = vpop.f32.mrb[5].mxu0  ;;  %v2137_v15 = vpop.f32.mrb[4].mxu1  ;;  %v3615_v20 = vadd.f32 %v2064_v12, %v5312_v11  ;;  %4029 = vtanh.f32 %v3629_v13 }
 0x28d   : > { %v2068_v18 = vpop.f32.mrb[6].mxu0  ;;  %v2139_v19 = vpop.f32.mrb[5].mxu1  ;;  %v3616_v24 = vadd.f32 %v2066_v14, %v5312_v11  ;;  %v3631_v27 = vadd.f32 %v2137_v15, %v5312_v11  ;;  %4031 = vtanh.f32 %v3630_v16 }
 0x28e   : > { %v5317_v22 = vpop.f32.mrb[7].mxu0  ;;  %v5319_v23 = vpop.f32.mrb[6].mxu1  ;;  %v3617_v28 = vadd.f32 %v2068_v18, %v5324_v26  ;;  %4033 = vtanh.f32 %v3615_v20  ;;  %v3632_v29 = vadd.f32 %v2139_v19, %v5312_v11 }
 0x28f   : > { %v5322_v25 = vpop.f32.mrb[7].mxu1  ;;  %4035 = vtanh.f32 %v3616_v24 }
 0x290   : > { %v5329_v32 = vpop.eup %4017  ;;  %4037 = vtanh.f32 %v3631_v27 }
 0x291   : > { %v5332_v36 = vpop.eup %4019  ;;  %4039 = vtanh.f32 %v3617_v28 }
 0x292   : > { %v5336_v41 = vpop.eup %4021  ;;  %4041 = vtanh.f32 %v3632_v29 }
 0x293   : > { %v2074_v30 = vpop.f32.mrb[8].mxu0  ;;  %v5340_v45 = vpop.eup %4023 }
 0x294   : > { %v3619_v33 = vadd.f32 %v2074_v30, %v5296_v46  ;;  %v2076_v34 = vpop.f32.mrb[9].mxu0  ;;  %v2147_v35 = vpop.f32.mrb[8].mxu1 }
 0x295   : > { %v3620_v37 = vadd.f32 %v2076_v34, %v5296_v46  ;;  %v3635_v38 = vadd.f32 %v2147_v35, %v5296_v46  ;;  %v2078_v39 = vpop.f32.mrb[10].mxu0  ;;  %v2149_v40 = vpop.f32.mrb[9].mxu1 }
 0x296   : > { %v3549_v42 = vmul.f32 -1.442695, %v3619_v33  ;;  %v3621_v8 = vadd.f32 %v2078_v39, %v5294_v31  ;;  %v3636_v7 = vadd.f32 %v2149_v40, %v5296_v46  ;;  %v2080_v43 = vpop.f32.mrb[11].mxu0  ;;  %v2151_v44 = vpop.f32.mrb[10].mxu1 }
 0x297   : > { %v3550_v47 = vmul.f32 -1.442695, %v3620_v37  ;;  %v3551_v48 = vmul.f32 -1.442695, %v3635_v38  ;;  %v3622_v49 = vadd.f32 %v2080_v43, %v5294_v31  ;;  %v3637_v52 = vadd.f32 %v2151_v44, %v5294_v31  ;;  %v2153_v53 = vpop.f32.mrb[11].mxu1  ;;  %v5344_v4 = vpop.eup %4025 }
 0x298   : > { %4043 = vpow2.f32 %v3549_v42  ;;  %v3557_v6 = vmul.f32 -1.442695, %v3621_v8  ;;  %v3552_v17 = vmul.f32 -1.442695, %v3636_v7  ;;  %v3638_v21 = vadd.f32 %v2153_v53, %v5294_v31  ;;  %v5347_v55 = vpop.eup %4027 }
 0x299   : > { %4045 = vpow2.f32 %v3550_v47  ;;  %v3558_v57 = vmul.f32 -1.442695, %v3622_v49  ;;  %v5349_v58 = vpop.eup %4029  ;;  %v3559_v61 = vmul.f32 -1.442695, %v3637_v52 }
 0x29a   : > { %4047 = vpow2.f32 %v3551_v48  ;;  %v5351_v62 = vpop.eup %4031  ;;  %v3560_v56 = vmul.f32 -1.442695, %v3638_v21  ;;  %v3618_v21 = vadd.f32 %v5317_v22, %v5324_v26 }
 0x29b   : > { %4049 = vpow2.f32 %v3557_v6  ;;  %v2084_v59 = vpop.f32.mrb[12].mxu0  ;;  %v5353_v60 = vpop.eup %4033 }
 0x29c   : > { %4051 = vpow2.f32 %v3552_v17  ;;  %v3623_v63 = vadd.f32 %v2084_v59, %v5298_v50  ;;  %v2086_v2 = vpop.f32.mrb[13].mxu0  ;;  %v2157_v3 = vpop.f32.mrb[12].mxu1 }
 0x29d   : > { %v5356_v5 = vpop.eup %4035  ;;  %4053 = vpow2.f32 %v3558_v57  ;;  %v3624_v9 = vadd.f32 %v2086_v2, %v5298_v50  ;;  %v3639_v10 = vadd.f32 %v2157_v3, %v5298_v50  ;;  %v2088_v12 = vpop.f32.mrb[14].mxu0 }
 0x29e   : > { %v2159_v13 = vpop.f32.mrb[13].mxu1  ;;  %v5360_v14 = vpop.eup %4037  ;;  %4055 = vpow2.f32 %v3559_v61  ;;  %v3565_v15 = vmul.f32 -1.442695, %v3623_v63  ;;  %v3625_v16 = vadd.f32 %v2088_v12, %v5300_v51 }
 0x29f   : > { %v3640_v18 = vadd.f32 %v2159_v13, %v5298_v50  ;;  %v2090_v19 = vpop.f32.mrb[15].mxu0  ;;  %v2161_v20 = vpop.f32.mrb[14].mxu1  ;;  %4057 = vpow2.f32 %v3560_v56  ;;  %v3566_v27 = vmul.f32 -1.442695, %v3624_v9  ;;  %v3567_v28 = vmul.f32 -1.442695, %v3639_v10 }
 0x2a0   : > { %v5364_v24 = vpop.eup %4039  ;;  %v2163_v29 = vpop.f32.mrb[15].mxu1  ;;  %4059 = vpow2.f32 %v3565_v15  ;;  %v3573_v33 = vmul.f32 -1.442695, %v3625_v16  ;;  %v3626_v10 = vadd.f32 %v2090_v19, %v5300_v51  ;;  %v3641_v22 = vadd.f32 %v2161_v20, %v5300_v51 }
 0x2a1   : > { %v5366_v30 = vpop.eup %4041  ;;  %v3568_v34 = vmul.f32 -1.442695, %v3640_v18  ;;  %4061 = vpow2.f32 %v3566_v27  ;;  %v3633_v18 = vadd.f32 %v5319_v23, %v5324_v26 }
 0x2a2   : > { %v4044_v35 = vpop.eup %4043  ;;  %4063 = vpow2.f32 %v3567_v28  ;;  %v3642_v28 = vadd.f32 %v2163_v29, %v5300_v51  ;;  %v3574_v23 = vmul.f32 -1.442695, %v3626_v10 }
 0x2a3   : > { %v4046_v37 = vpop.eup %4045  ;;  %v2504_v38 = vadd.f32 1.0, %v4044_v35  ;;  %4065 = vpow2.f32 %v3573_v33  ;;  %v5368_v39 = vpop.f32.mrb[16].mxu0  ;;  %v3634_v35 = vadd.f32 %v5322_v25, %v5324_v26 }
 0x2a4   : > { %v4048_v40 = vpop.eup %4047  ;;  %v2505_v42 = vadd.f32 1.0, %v4046_v37  ;;  %4067 = vpow2.f32 %v3568_v34  ;;  %v5370_v8 = vpop.f32.mrb[17].mxu0  ;;  %v3576_v25 = vmul.f32 -1.442695, %v3642_v28 }
 0x2a5   : > { %v5372_v7 = vpop.f32.mrb[16].mxu1  ;;  %v4050_v43 = vpop.eup %4049  ;;  %4069 = vrcp.f32 %v2504_v38  ;;  %v2506_v44 = vadd.f32 1.0, %v4048_v40 }
 0x2a6   : > { %v5374_v47 = vpop.f32.mrb[18].mxu0  ;;  %v5376_v48 = vpop.f32.mrb[17].mxu1  ;;  %4071 = vrcp.f32 %v2505_v42  ;;  %v2512_v52 = vadd.f32 1.0, %v4050_v43  ;;  %v3575_v43 = vmul.f32 -1.442695, %v3641_v22 }
 0x2a7   : > { %v4052_v49 = vpop.eup %4051  ;;  %v5378_v53 = vpop.f32.mrb[19].mxu0  ;;  %4073 = vrcp.f32 %v2506_v44 }
 0x2a8   : > { %v5380_v6 = vpop.f32.mrb[18].mxu1  ;;  %v4054_v17 = vpop.eup %4053  ;;  %v2507_v57 = vadd.f32 1.0, %v4052_v49  ;;  %4075 = vrcp.f32 %v2512_v52 }
 0x2a9   : > { %v5384_v61 = vpop.f32.mrb[19].mxu1  ;;  %v4056_v56 = vpop.eup %4055  ;;  %v2513_v59 = vadd.f32 1.0, %v4054_v17 }
 0x2aa   : > { %v4058_v63 = vpop.eup %4057  ;;  %4077 = vrcp.f32 %v2507_v57  ;;  %v2514_v2 = vadd.f32 1.0, %v4056_v56 }
 0x2ab   : > { %v4060_v3 = vpop.eup %4059  ;;  %4079 = vrcp.f32 %v2513_v59  ;;  %v2515_v9 = vadd.f32 1.0, %v4058_v63  ;;  %v5388_v15 = vpop.f32.mrb[20].mxu0 }
 0x2ac   : > { %v4062_v12 = vpop.eup %4061  ;;  %4081 = vtanh.f32 %v3618_v21  ;;  %v2520_v13 = vadd.f32 1.0, %v4060_v3  ;;  %v5393_v33 = vpop.f32.mrb[21].mxu0 }
 0x2ad   : > { %v4064_v16 = vpop.eup %4063  ;;  %4083 = vrcp.f32 %v2514_v2  ;;  %v2521_v27 = vadd.f32 1.0, %v4062_v12  ;;  %v5395_v34 = vpop.f32.mrb[20].mxu1 }
 0x2ae   : > { %v4066_v19 = vpop.eup %4065  ;;  %4085 = vrcp.f32 %v2515_v9  ;;  %v5399_v20 = vpop.f32.mrb[22].mxu0  ;;  %v2522_v3 = vadd.f32 1.0, %v4064_v16  ;;  %v3644_v16 = vadd.f32 %v5370_v8, %v5302_v54  ;;  %v3645_v8 = vadd.f32 %v5374_v47, %v5306_v1 }
 0x2af   : > { %v5401_v37 = vpop.f32.mrb[21].mxu1  ;;  %v4068_v38 = vpop.eup %4067  ;;  %4087 = vrcp.f32 %v2521_v27  ;;  %v2528_v21 = vadd.f32 1.0, %v4066_v19 }
 0x2b0   : > { %v5403_v40 = vpop.f32.mrb[23].mxu0  ;;  %v5405_v42 = vpop.f32.mrb[22].mxu1  ;;  %4089 = vrcp.f32 %v2520_v13  ;;  %v2523_v59 = vadd.f32 1.0, %v4068_v38 }
 0x2b1   : > { %v4070_v29 = vpop.eup %4069  ;;  %v5407_v44 = vpop.f32.mrb[23].mxu1  ;;  %4091 = vtanh.f32 %v3633_v18 }
 0x2b2   : > { %v4072_v49 = vpop.eup %4071  ;;  %v2600_v52 = vmul.f32 %v4070_v29, %v5329_v32  ;;  %4093 = vtanh.f32 %v3634_v35  ;;  %v3643_v32 = vadd.f32 %v5368_v39, %v5302_v54  ;;  %v3659_v39 = vadd.f32 %v5372_v7, %v5302_v54 }
 0x2b3   : > { %v4074_v17 = vpop.eup %4073  ;;  %v2601_v57 = vmul.f32 %v4072_v49, %v5332_v36  ;;  %4095 = vpow2.f32 %v3574_v23  ;;  %v5414_v9 = vpop.f32.mrb[24].mxu0  ;;  %v3646_v7 = vadd.f32 %v5378_v53, %v5306_v1 }
 0x2b4   : > { %v4076_v56 = vpop.eup %4075  ;;  %v5412_v63 = vmul.f32 %v4074_v17, %v5336_v41  ;;  %4097 = vpow2.f32 %v3575_v43  ;;  %v5419_v13 = vpop.f32.mrb[25].mxu0 }
 0x2b5   : > { %v4078_v2 = vpop.eup %4077  ;;  %v2608_v10 = vmul.f32 %v4076_v56, %v5344_v4  ;;  %4099 = vpow2.f32 %v3576_v25  ;;  %v5421_v36 = vpop.f32.mrb[24].mxu1  ;;  %v3661_v25 = vadd.f32 %v5380_v6, %v5306_v1 }
 0x2b6   : > { %v4080_v12 = vpop.eup %4079  ;;  %v2603_v22 = vmul.f32 %v4078_v2, %v5340_v45  ;;  %4101 = vrcp.f32 %v2528_v21  ;;  %v5428_v18 = vpop.f32.mrb[26].mxu0 }
 0x2b7   : > { %v5424_v41 = vpop.eup %4081  ;;  %v5430_v4 = vpop.f32.mrb[25].mxu1  ;;  %v2609_v27 = vmul.f32 %v4080_v12, %v5347_v55  ;;  %4103 = vrcp.f32 %v2523_v59  ;;  %v3660_v55 = vadd.f32 %v5376_v48, %v5302_v54  ;;  %v2632_v47 = vpack.c.bf16 %v2608_v10, %v2600_v52 }
 0x2b8   : > { %v4084_v28 = vpop.eup %4083  ;;  %v5435_v19 = vpop.f32.mrb[27].mxu0  ;;  %4105 = vrcp.f32 %v2522_v3 }
 0x2b9   : > { %v5437_v45 = vpop.f32.mrb[26].mxu1  ;;  %v4086_v35 = vpop.eup %4085  ;;  %4107 = vtanh.f32 %v3643_v32  ;;  %v2633_v43 = vpack.c.bf16 %v2609_v27, %v2601_v57  ;;  %v2610_v54 = vmul.f32 %v4084_v28, %v5349_v58  ;;  %v3662_v32 = vadd.f32 %v5384_v61, %v5306_v1 }
 0x2ba   : > { %v5441_v38 = vpop.f32.mrb[27].mxu1  ;;  %v4088_v23 = vpop.eup %4087  ;;  %4109 = vtanh.f32 %v3644_v16  ;;  %v2611_v17 = vmul.f32 %v4086_v35, %v5351_v62  ;;  %v3651_v28 = vadd.f32 %v5414_v9, %v5296_v46  ;;  %v3648_v1 = vadd.f32 %v5393_v33, %v5312_v11 }
 0x2bb   : > { %v4090_v29 = vpop.eup %4089  ;;  %4111 = vtanh.f32 %v3659_v39  ;;  %2736 = vmatprep.subr.bf16.mxu0 %v2633_v43  ;;  %v5455_v48 = vpop.f32.mrb[28].mxu0  ;;  %v5458_v53 = vmul.f32 %v4088_v23, %v5356_v5  ;;  %v2634_v58 = vpack.c.bf16 %v2610_v54, %v5412_v63  ;;  %v3647_v63 = vadd.f32 %v5388_v15, %v5312_v11 }
 0x2bc   : > { %v5447_v49 = vpop.eup %4091  ;;  %4113 = vtanh.f32 %v3645_v8  ;;  %2737 = vmatpush1.bf16.msra.mxu0 %v2632_v47  ;;  %v2635_v56 = vpack.c.bf16 %v2611_v17, %v2603_v22  ;;  %v5460_v59 = vpop.f32.mrb[29].mxu0  ;;  %v5465_v62 = vmul.f32 %v4090_v29, %v5353_v60  ;;  %v3663_v8 = vadd.f32 %v5395_v34, %v5312_v11 }
 0x2bd   : > { %v5452_v21 = vpop.eup %4093  ;;  %4115 = vtanh.f32 %v3660_v55  ;;  %v5462_v6 = vpop.f32.mrb[28].mxu1  ;;  %v3649_v23 = vadd.f32 %v5399_v20, %v5324_v26  ;;  %v3652_v15 = vadd.f32 %v5419_v13, %v5296_v46  ;;  %v3664_v55 = vadd.f32 %v5401_v37, %v5312_v11 }
 0x2be   : > { %v4096_v57 = vpop.eup %4095  ;;  %4117 = vtanh.f32 %v3646_v7  ;;  %v5468_v3 = vpop.f32.mrb[30].mxu0  ;;  %2809 = vmatprep.subr.bf16.mxu1 %v2635_v56  ;;  %v3667_v33 = vadd.f32 %v5421_v36, %v5296_v46  ;;  %v3553_v34 = vmul.f32 -1.442695, %v3651_v28  ;;  %v3653_v20 = vadd.f32 %v5428_v18, %v5294_v31 }
 0x2bf   : > { %v4098_v52 = vpop.eup %4097  ;;  %v2529_v2 = vadd.f32 1.0, %v4096_v57  ;;  %v5470_v5 = vpop.f32.mrb[29].mxu1  ;;  %4119 = vtanh.f32 %v3661_v25  ;;  %2810 = vmatpush1.bf16.msra.mxu1 %v2634_v58  ;;  %v3668_v11 = vadd.f32 %v5430_v4, %v5296_v46  ;;  %v3554_v25 = vmul.f32 -1.442695, %v3652_v15 }
 0x2c0   : > { %v4100_v10 = vpop.eup %4099  ;;  %v2530_v12 = vadd.f32 1.0, %v4098_v52  ;;  %v5474_v22 = vpop.f32.mrb[31].mxu0  ;;  %v3654_v47 = vadd.f32 %v5435_v19, %v5294_v31  ;;  %v3555_v17 = vmul.f32 -1.442695, %v3667_v33  ;;  %v3670_v46 = vadd.f32 %v5441_v38, %v5294_v31 }
 0x2c1   : > { %v5476_v60 = vpop.f32.mrb[30].mxu1  ;;  %v4102_v16 = vpop.eup %4101  ;;  %4121 = vrcp.f32 %v2529_v2  ;;  %v2531_v27 = vadd.f32 1.0, %v4100_v10  ;;  %v3655_v54 = vadd.f32 %v5455_v48, %v5298_v50  ;;  %v3556_v19 = vmul.f32 -1.442695, %v3668_v11  ;;  %v5564_v11 = vld [vmem:[%s6001_s22 + $0x8] sm:$0xff]  }
 0x2c2   : > { %v5482_v39 = vpop.f32.mrb[31].mxu1  ;;  %v4104_v35 = vpop.eup %4103  ;;  %4123 = vrcp.f32 %v2530_v12  ;;  %v2624_v29 = vmul.f32 %v4102_v16, %v5364_v24  ;;  %v3656_v52 = vadd.f32 %v5460_v59, %v5298_v50  ;;  %v3671_v38 = vadd.f32 %v5462_v6, %v5298_v50 }
 0x2c3   : > { %v4106_v61 = vpop.eup %4105  ;;  %4125 = vrcp.f32 %v2531_v27  ;;  %v2619_v13 = vmul.f32 %v4104_v35, %v5366_v30  ;;  %v3669_v30 = vadd.f32 %v5437_v45, %v5294_v31  ;;  %v3562_v45 = vmul.f32 -1.442695, %v3654_v47 }
 0x2c4   : > { %v5492_v9 = vpop.eup %4107  ;;  %4127 = vtanh.f32 %v3662_v32  ;;  %v2640_v37 = vpack.c.bf16 %v2624_v29, %v5465_v62  ;;  %v2618_v36 = vmul.f32 %v4106_v61, %v5360_v14  ;;  %v3561_v14 = vmul.f32 -1.442695, %v3653_v20 }
 0x2c5   : > { %v5499_v7 = vpop.eup %4109  ;;  %4129 = vtanh.f32 %v3647_v63  ;;  %v3563_v62 = vmul.f32 -1.442695, %v3669_v30  ;;  %v3564_v31 = vmul.f32 -1.442695, %v3670_v46  ;;  %v3569_v10 = vmul.f32 -1.442695, %v3655_v54 }
 0x2c6   : > { %v5504_v43 = vpop.eup %4111  ;;  %4131 = vtanh.f32 %v3648_v1  ;;  %v3657_v12 = vadd.f32 %v5468_v3, %v5300_v51  ;;  %v3672_v59 = vadd.f32 %v5470_v5, %v5298_v50  ;;  %v3571_v3 = vmul.f32 -1.442695, %v3671_v38  ;;  %v5547_v1 = vld [vmem:[%s6001_s22] sm:$0xff]  }
 0x2c7   : > { %v5510_v24 = vpop.eup %4113  ;;  %4133 = vtanh.f32 %v3663_v8  ;;  %v3658_v54 = vadd.f32 %v5474_v22, %v5300_v51 }
 0x2c8   : > { %v5516_v18 = vpop.eup %4115  ;;  %4135 = vtanh.f32 %v3649_v23  ;;  %v3572_v5 = vmul.f32 -1.442695, %v3672_v59 }
 0x2c9   : > { %v5520_v4 = vpop.eup %4117  ;;  %4137 = vtanh.f32 %v3664_v55 }
 0x2ca   : > { %v5524_v57 = vpop.eup %4119  ;;  %4139 = vpow2.f32 %v3553_v34 }
 0x2cb   : > { %v4122_v56 = vpop.eup %4121  ;;  %4141 = vpow2.f32 %v3554_v25 }
 0x2cc   : > { %v4124_v2 = vpop.eup %4123  ;;  %4143 = vpow2.f32 %v3555_v17  ;;  %v2625_v58 = vmul.f32 %v4122_v56, %v5424_v41  ;;  %v3570_v41 = vmul.f32 -1.442695, %v3656_v52 }
 0x2cd   : > { %v4126_v48 = vpop.eup %4125  ;;  %4145 = vpow2.f32 %v3561_v14  ;;  %v2626_v32 = vmul.f32 %v4124_v2, %v5447_v49  ;;  %v3674_v2 = vadd.f32 %v5482_v39, %v5300_v51 }
 0x2ce   : > { %v5534_v16 = vpop.eup %4127  ;;  %4147 = vpow2.f32 %v3556_v19  ;;  %v2641_v27 = vpack.c.bf16 %v2625_v58, %v5458_v53  ;;  %v2627_v6 = vmul.f32 %v4126_v48, %v5452_v21  ;;  %v3577_v21 = vmul.f32 -1.442695, %v3657_v12  ;;  %v5581_v48 = vld [vmem:[%s6001_s22 + $0x10] sm:$0xff]  }
 0x2cf   : > { %v5540_v63 = vpop.eup %4129  ;;  %4149 = vpow2.f32 %v3562_v45  ;;  %v2642_v28 = vpack.c.bf16 %v2626_v32, %v2618_v36  ;;  %v3673_v45 = vadd.f32 %v5476_v60, %v5300_v51  ;;  %v3578_v60 = vmul.f32 -1.442695, %v3658_v54 }
 0x2d0   : > { %v5542_v35 = vpop.eup %4131  ;;  %4151 = vpow2.f32 %v3563_v62  ;;  %2738 = vmatprep.subr.bf16.mxu0 %v2641_v27  ;;  %v2643_v49 = vpack.c.bf16 %v2627_v6, %v2619_v13  ;;  %v3580_v32 = vmul.f32 -1.442695, %v3674_v2 }
 0x2d1   : > { %v5549_v50 = vpop.eup %4133  ;;  %4153 = vpow2.f32 %v3564_v31  ;;  %2739 = vmatpush1.bf16.msra.mxu0 %v2640_v37  ;;  %v3579_v39 = vmul.f32 -1.442695, %v3673_v45 }
 0x2d2   : > { %v5551_v53 = vpop.eup %4135  ;;  %4155 = vpow2.f32 %v3569_v10  ;;  %2811 = vmatprep.subr.bf16.mxu1 %v2643_v49 }
 0x2d3   : > { %v5553_v61 = vpop.eup %4137  ;;  %4157 = vpow2.f32 %v3570_v41  ;;  %2812 = vmatpush1.bf16.msra.mxu1 %v2642_v28 }
 0x2d4   : > { %v4140_v8 = vpop.eup %4139  ;;  %4159 = vpow2.f32 %v3571_v3  ;;  %3585 = vmatmul.mubr.msk.bf16.vlgmr.msra.gmra.mrb[32].mxu0 %vm1128_vm2, %v5547_v1 }
 0x2d5   : > { %v4142_v23 = vpop.eup %4141  ;;  %v2508_v15 = vadd.f32 1.0, %v4140_v8  ;;  %4161 = vpow2.f32 %v3577_v21  ;;  %2778 = vmatprep.mubr.bf16.mxu0 %v4487_v0 }
 0x2d6   : > { %v4144_v55 = vpop.eup %4143  ;;  %v2509_v33 = vadd.f32 1.0, %v4142_v23  ;;  %4163 = vpow2.f32 %v3572_v5  ;;  %3589 = vmatmul.mubr.msk.bf16.vlgmr.msra.gmra.mrb[32].mxu1 %vm1128_vm2, %v5547_v1 }
 0x2d7   : > { %v4146_v29 = vpop.eup %4145  ;;  %4165 = vrcp.f32 %v2508_v15  ;;  %v2510_v34 = vadd.f32 1.0, %v4144_v55  ;;  %2851 = vmatprep.mubr.bf16.mxu1 %v4487_v0 }
 0x2d8   : > { %v4148_v20 = vpop.eup %4147  ;;  %4167 = vrcp.f32 %v2509_v33  ;;  %v2516_v13 = vadd.f32 1.0, %v4146_v29  ;;  %v5600_v33 = vld [vmem:[%s6001_s22 + $0x18] sm:$0xff]  }
 0x2d9   : > { %v4150_v37 = vpop.eup %4149  ;;  %4169 = vrcp.f32 %v2510_v34  ;;  %v2511_v36 = vadd.f32 1.0, %v4148_v20 }
 0x2da   : > { %v4152_v25 = vpop.eup %4151  ;;  %4171 = vrcp.f32 %v2516_v13  ;;  %v2517_v47 = vadd.f32 1.0, %v4150_v37 }
 0x2db   : > { %v4154_v30 = vpop.eup %4153  ;;  %4173 = vrcp.f32 %v2511_v36  ;;  %v2518_v17 = vadd.f32 1.0, %v4152_v25  ;;  %v3666_v36 = vadd.f32 %v5407_v44, %v5324_v26 }
 0x2dc   : > { %v4156_v46 = vpop.eup %4155  ;;  %4175 = vrcp.f32 %v2517_v47  ;;  %v2519_v14 = vadd.f32 1.0, %v4154_v30  ;;  %3586 = vmatmul.mubr.msk.bf16.gmra.mrb[36].mxu0 %vm1128_vm2, %v5564_v11 }
 0x2dd   : > { %v4158_v19 = vpop.eup %4157  ;;  %4177 = vrcp.f32 %v2518_v17  ;;  %v2524_v56 = vadd.f32 1.0, %v4156_v46  ;;  %2788 = vmatprep.mubr.bf16.mxu0 %v4487_v0 }
 0x2de   : > { %v4160_v62 = vpop.eup %4159  ;;  %4179 = vrcp.f32 %v2519_v14  ;;  %v2525_v52 = vadd.f32 1.0, %v4158_v19  ;;  %3590 = vmatmul.mubr.msk.bf16.gmra.mrb[36].mxu1 %vm1128_vm2, %v5564_v11 }
 0x2df   : > { %v4162_v22 = vpop.eup %4161  ;;  %4181 = vrcp.f32 %v2524_v56  ;;  %v2526_v31 = vadd.f32 1.0, %v4160_v62  ;;  %2861 = vmatprep.mubr.bf16.mxu1 %v4487_v0 }
 0x2e0   : > { %v4164_v38 = vpop.eup %4163  ;;  %4183 = vrcp.f32 %v2525_v52  ;;  %v2532_v58 = vadd.f32 1.0, %v4162_v22 }
 0x2e1   : > { %v4166_v10 = vpop.eup %4165  ;;  %4185 = vrcp.f32 %v2526_v31  ;;  %v2527_v51 = vadd.f32 1.0, %v4164_v38 }
 0x2e2   : > { %v4168_v12 = vpop.eup %4167  ;;  %4187 = vrcp.f32 %v2532_v58  ;;  %v2604_v59 = vmul.f32 %v4166_v10, %v5492_v9 }
 0x2e3   : > { %v4170_v27 = vpop.eup %4169  ;;  %4189 = vrcp.f32 %v2527_v51  ;;  %v2605_v6 = vmul.f32 %v4168_v12, %v5499_v7 }
 0x2e4   : > { %v4172_v41 = vpop.eup %4171  ;;  %4191 = vpow2.f32 %v3578_v60  ;;  %3587 = vmatmul.mubr.msk.bf16.gmra.mrb[40].mxu0 %vm1128_vm2, %v5581_v48  ;;  %v2606_v28 = vmul.f32 %v4170_v27, %v5504_v43 }
 0x2e5   : > { %v4174_v3 = vpop.eup %4173  ;;  %4193 = vpow2.f32 %v3579_v39  ;;  %v2612_v49 = vmul.f32 %v4172_v41, %v5510_v24  ;;  %2798 = vmatprep.mubr.bf16.mxu0 %v4487_v0 }
 0x2e6   : > { %v4176_v21 = vpop.eup %4175  ;;  %4195 = vpow2.f32 %v3580_v32  ;;  %3591 = vmatmul.mubr.msk.bf16.gmra.mrb[40].mxu1 %vm1128_vm2, %v5581_v48  ;;  %v2607_v9 = vmul.f32 %v4174_v3, %v5516_v18  ;;  %v3650_v18 = vadd.f32 %v5403_v40, %v5324_v26 }
 0x2e7   : > { %v4178_v7 = vpop.eup %4177  ;;  %v2613_v5 = vmul.f32 %v4176_v21, %v5520_v4  ;;  %v2636_v8 = vpack.c.bf16 %v2612_v49, %v2604_v59  ;;  %2871 = vmatprep.mubr.bf16.mxu1 %v4487_v0 }
 0x2e8   : > { %v4180_v43 = vpop.eup %4179  ;;  %v2614_v23 = vmul.f32 %v4178_v7, %v5524_v57  ;;  %v3665_v57 = vadd.f32 %v5405_v42, %v5324_v26  ;;  %4197 = vtanh.f32 %v3650_v18 }
 0x2e9   : > { %v4182_v15 = vpop.eup %4181  ;;  %v2637_v24 = vpack.c.bf16 %v2613_v5, %v2605_v6  ;;  %v2615_v55 = vmul.f32 %v4180_v43, %v5534_v16 }
 0x2ea   : > { %v4184_v29 = vpop.eup %4183  ;;  %v2638_v4 = vpack.c.bf16 %v2614_v23, %v2606_v28  ;;  %v2620_v34 = vmul.f32 %v4182_v15, %v5540_v63  ;;  %4199 = vtanh.f32 %v3665_v57 }
 0x2eb   : > { %v4186_v20 = vpop.eup %4185  ;;  %2882 = vmatprep.subr.bf16.mxu0 %v2637_v24  ;;  %v2639_v13 = vpack.c.bf16 %v2615_v55, %v2607_v9  ;;  %v2621_v16 = vmul.f32 %v4184_v29, %v5542_v35  ;;  %4201 = vtanh.f32 %v3666_v36  ;;  %v4209_v36 = vld [vmem:[%s4827_s14] sm:$0xff] }
 0x2ec   : > { %v4188_v37 = vpop.eup %4187  ;;  %2883 = vmatpush1.bf16.msra.mxu0 %v2636_v8  ;;  %v2622_v25 = vmul.f32 %v4186_v20, %v5549_v50 }
 0x2ed   : > { %v4190_v47 = vpop.eup %4189  ;;  %2955 = vmatprep.subr.bf16.mxu1 %v2639_v13  ;;  %3588 = vmatmul.mubr.msk.bf16.gmra.mrb[44].mxu0 %vm1128_vm2, %v5600_v33  ;;  %v2628_v40 = vmul.f32 %v4188_v37, %v5551_v53 }
 0x2ee   : > { %v4192_v63 = vpop.eup %4191  ;;  %2956 = vmatpush1.bf16.msra.mxu1 %v2638_v4  ;;  %v2623_v42 = vmul.f32 %v4190_v47, %v5553_v61  ;;  %2914 = vmatprep.mubr.bf16.mxu0 %v4487_v0 }
 0x2ef   : > { %v4194_v35 = vpop.eup %4193  ;;  %v2533_v26 = vadd.f32 1.0, %v4192_v63  ;;  %3592 = vmatmul.mubr.msk.bf16.gmra.mrb[44].mxu1 %vm1128_vm2, %v5600_v33  ;;  %v2644_v44 = vpack.c.bf16 %v2628_v40, %v2620_v34  ;;  %v3061_v40 = vunpack.c.h.bf16 %v4209_v36 }
 0x2f0   : > { %v4196_v50 = vpop.eup %4195  ;;  %v2534_v30 = vadd.f32 1.0, %v4194_v35  ;;  %2987 = vmatprep.mubr.bf16.mxu1 %v4487_v0  ;;  %v4210_v35 = vld [vmem:[%s4827_s14 + $0x8] sm:$0xff] }
 0x2f1   : > { %4203 = vrcp.f32 %v2533_v26  ;;  %v2535_v53 = vadd.f32 1.0, %v4196_v50  ;;  %v3062_v26 = vunpack.c.l.bf16 %v4210_v35 }
 0x2f2   : > { %4205 = vrcp.f32 %v2534_v30  ;;  %v4198_v17 = vpop.eup %4197 }
 0x2f3   : > { %4207 = vrcp.f32 %v2535_v53 }
 0x2f4   : > { %v4200_v61 = vpop.eup %4199 }
 0x2f5   : > { %v4202_v46 = vpop.eup %4201 }
 0x2fb   : > { %v4204_v14 = vpop.eup %4203 }
 0x2fc   : > { %v4206_v54 = vpop.eup %4205  ;;  %v2629_v19 = vmul.f32 %v4204_v14, %v4198_v17 }
 0x2fd   : > { %v4208_v56 = vpop.eup %4207  ;;  %v2630_v45 = vmul.f32 %v4206_v54, %v4200_v61  ;;  %v3063_v61 = vunpack.c.h.bf16 %v4210_v35 }
 0x2fe   : > { %v2645_v62 = vpack.c.bf16 %v2629_v19, %v2621_v16  ;;  %v2631_v52 = vmul.f32 %v4208_v56, %v4202_v46 }
 0x2ff   : > { %v2646_v2 = vpack.c.bf16 %v2630_v45, %v2622_v25  ;;  %v3060_v25 = vunpack.c.l.bf16 %v4209_v36 }
 0x300   : > { %2884 = vmatprep.subr.bf16.mxu0 %v2645_v62  ;;  %v2647_v22 = vpack.c.bf16 %v2631_v52, %v2623_v42  ;;  %v4212_v62 = vld [vmem:[%s4827_s14 + $0x28] sm:$0xff] }
 0x301   : > { %2885 = vmatpush1.bf16.msra.mxu0 %v2644_v44  ;;  %v4211_v44 = vld [vmem:[%s4827_s14 + $0x20] sm:$0xff]  ;;  %v3070_v52 = vunpack.c.l.bf16 %v4212_v62 }
 0x302   : > { %2957 = vmatprep.subr.bf16.mxu1 %v2647_v22  ;;  %v3068_v50 = vunpack.c.l.bf16 %v4211_v44  ;;  %v3069_v46 = vunpack.c.h.bf16 %v4211_v44  ;;  %v4216_v44 = vld [vmem:[%s4827_s14 + $0x68] sm:$0xff] }
 0x303   : > { %2958 = vmatpush1.bf16.msra.mxu1 %v2646_v2 }
 0x304   : > { %3593 = vmatmul.mubr.msk.bf16.vlgmr.msra.gmra.mrb[48].mxu0 %vm1128_vm2, %v5547_v1 }
 0x305   : > { %2924 = vmatprep.mubr.bf16.mxu0 %v4487_v0 }
 0x306   : > { %3597 = vmatmul.mubr.msk.bf16.vlgmr.msra.gmra.mrb[48].mxu1 %vm1128_vm2, %v5547_v1  ;;  %v5641_v1 = vpop.permute.xlu1 %2686 }
 0x307   : > { %2997 = vmatprep.mubr.bf16.mxu1 %v4487_v0 }
 0x30a   : > { %v5645_v31 = vpop.permute.xlu1 %2696 }
 0x30c   : > { %3594 = vmatmul.mubr.msk.bf16.gmra.mrb[52].mxu0 %vm1128_vm2, %v5564_v11 }
 0x30d   : > { %2934 = vmatprep.mubr.bf16.mxu0 %v4487_v0 }
 0x30e   : > { %3598 = vmatmul.mubr.msk.bf16.gmra.mrb[52].mxu1 %vm1128_vm2, %v5564_v11  ;;  %v5643_v11 = vpop.permute.xlu0 %2691  ;;  %v5650_v58 = vpop.permute.xlu1 %2666 }
 0x30f   : > { %3007 = vmatprep.mubr.bf16.mxu1 %v4487_v0 }
 0x312   : > { %v5647_v38 = vpop.permute.xlu0 %2701  ;;  %v5673_v7 = vpop.permute.xlu1 %2676 }
 0x314   : > { %3595 = vmatmul.mubr.msk.bf16.gmra.mrb[56].mxu0 %vm1128_vm2, %v5581_v48 }
 0x315   : > { %2944 = vmatprep.mubr.bf16.mxu0 %v4487_v0 }
 0x316   : > { %3599 = vmatmul.mubr.msk.bf16.gmra.mrb[56].mxu1 %vm1128_vm2, %v5581_v48 }
 0x317   : > { %3017 = vmatprep.mubr.bf16.mxu1 %v4487_v0  ;;  %v5652_v0 = vpop.permute.xlu0 %2671 }
 0x31b   : > { %v5676_v8 = vpop.permute.xlu0 %2681 }
 0x31c   : > { %3596 = vmatmul.mubr.msk.bf16.gmra.mrb[60].mxu0 %vm1128_vm2, %v5600_v33 }
 0x31e   : > { %3600 = vmatmul.mubr.msk.bf16.gmra.mrb[60].mxu1 %vm1128_vm2, %v5600_v33 }
 0x3a7   : > { %v2770_v60 = vpop.f32.mrb[32].mxu0 }
 0x3a8   : > { %v2771_v48 = vadd.f32 %v2770_v60, %v5650_v58  ;;  %v2772_v10 = vpop.f32.mrb[33].mxu0 }
 0x3a9   : > { %v2773_v51 = vadd.f32 %v2772_v10, %v5650_v58  ;;  %v2843_v39 = vpop.f32.mrb[32].mxu1  ;;  %v2774_v12 = vpop.f32.mrb[34].mxu0  ;;  %v3071_v10 = vunpack.c.h.bf16 %v4212_v62 }
 0x3aa   : > { %3028 = vst [vmem:[%s5658_s8] sm:$0xff] %v2771_v48  ;;  %v2844_v32 = vadd.f32 %v2843_v39, %v5650_v58  ;;  %v2775_v59 = vadd.f32 %v2774_v12, %v5652_v0  ;;  %v2845_v27 = vpop.f32.mrb[33].mxu1  ;;  %v2776_v6 = vpop.f32.mrb[35].mxu0 }
 0x3ab   : > { %3029 = vst [vmem:[%s5658_s8 + $0x8] sm:$0xff] %v2773_v51  ;;  %v2846_v41 = vadd.f32 %v2845_v27, %v5650_v58  ;;  %v2777_v28 = vadd.f32 %v2776_v6, %v5652_v0  ;;  %v2847_v3 = vpop.f32.mrb[34].mxu1 }
 0x3ac   : > { %3030 = vst [vmem:[%s5658_s8 + $0x10] sm:$0xff] %v2844_v32  ;;  %3036 = vst [vmem:[%s5658_s8 + $0x40] sm:$0xff] %v2775_v59  ;;  %v2848_v49 = vadd.f32 %v2847_v3, %v5652_v0  ;;  %v2849_v21 = vpop.f32.mrb[35].mxu1 }
 0x3ad   : > { %3031 = vst [vmem:[%s5658_s8 + $0x18] sm:$0xff] %v2846_v41  ;;  %3037 = vst [vmem:[%s5658_s8 + $0x48] sm:$0xff] %v2777_v28  ;;  %v2850_v9 = vadd.f32 %v2849_v21, %v5652_v0 }
 0x3ae   : > { %3038 = vst [vmem:[%s5658_s8 + $0x50] sm:$0xff] %v2848_v49 }
 0x3af   : > { %3039 = vst [vmem:[%s5658_s8 + $0x58] sm:$0xff] %v2850_v9  ;;  %v2780_v5 = vpop.f32.mrb[36].mxu0 }
 0x3b0   : > { %v2781_v43 = vadd.f32 %v2780_v5, %v5673_v7  ;;  %v2782_v23 = vpop.f32.mrb[37].mxu0 }
 0x3b1   : > { %v2783_v15 = vadd.f32 %v2782_v23, %v5673_v7  ;;  %v2853_v24 = vpop.f32.mrb[36].mxu1  ;;  %v2784_v55 = vpop.f32.mrb[38].mxu0  ;;  %v4213_v23 = vld [vmem:[%s4827_s14 + $0x40] sm:$0xff] }
 0x3b2   : > { %3044 = vst [vmem:[%s5658_s8 + $0x80] sm:$0xff] %v2781_v43  ;;  %v2854_v33 = vadd.f32 %v2853_v24, %v5673_v7  ;;  %v2785_v29 = vadd.f32 %v2784_v55, %v5676_v8  ;;  %v2855_v18 = vpop.f32.mrb[37].mxu1  ;;  %v2786_v4 = vpop.f32.mrb[39].mxu0 }
 0x3b3   : > { %3045 = vst [vmem:[%s5658_s8 + $0x88] sm:$0xff] %v2783_v15  ;;  %v2856_v34 = vadd.f32 %v2855_v18, %v5673_v7  ;;  %v2787_v20 = vadd.f32 %v2786_v4, %v5676_v8  ;;  %v2857_v57 = vpop.f32.mrb[38].mxu1  ;;  %v3076_v15 = vunpack.c.l.bf16 %v4213_v23 }
 0x3b4   : > { %3046 = vst [vmem:[%s5658_s8 + $0x90] sm:$0xff] %v2854_v33  ;;  %3052 = vst [vmem:[%s5658_s8 + $0xc0] sm:$0xff] %v2785_v29  ;;  %v2858_v13 = vadd.f32 %v2857_v57, %v5676_v8  ;;  %v2859_v16 = vpop.f32.mrb[39].mxu1  ;;  %v3077_v33 = vunpack.c.h.bf16 %v4213_v23  ;;  %v4215_v57 = vld [vmem:[%s4827_s14 + $0x60] sm:$0xff] }
 0x3b5   : > { %3047 = vst [vmem:[%s5658_s8 + $0x98] sm:$0xff] %v2856_v34  ;;  %3053 = vst [vmem:[%s5658_s8 + $0xc8] sm:$0xff] %v2787_v20  ;;  %v2860_v37 = vadd.f32 %v2859_v16, %v5676_v8  ;;  %v4214_v34 = vld [vmem:[%s4827_s14 + $0x48] sm:$0xff] }
 0x3b6   : > { %3054 = vst [vmem:[%s5658_s8 + $0xd0] sm:$0xff] %v2858_v13  ;;  %v3078_v20 = vunpack.c.l.bf16 %v4214_v34  ;;  %v3084_v13 = vunpack.c.l.bf16 %v4215_v57 }
 0x3b7   : > { %3055 = vst [vmem:[%s5658_s8 + $0xd8] sm:$0xff] %v2860_v37  ;;  %v2790_v47 = vpop.f32.mrb[40].mxu0 }
 0x3b8   : > { %v2791_v63 = vadd.f32 %v2790_v47, %v5641_v1  ;;  %v2792_v42 = vpop.f32.mrb[41].mxu0  ;;  %v3085_v47 = vunpack.c.h.bf16 %v4215_v57 }
 0x3b9   : > { %v2793_v30 = vadd.f32 %v2792_v42, %v5641_v1  ;;  %v2863_v53 = vpop.f32.mrb[40].mxu1  ;;  %v2794_v17 = vpop.f32.mrb[42].mxu0 }
 0x3ba   : > { %v3092_v14 = vadd.f32 %v3060_v25, %v2791_v63  ;;  %v2864_v54 = vadd.f32 %v2863_v53, %v5641_v1  ;;  %v2795_v19 = vadd.f32 %v2794_v17, %v5643_v11  ;;  %v2865_v56 = vpop.f32.mrb[41].mxu1  ;;  %v2796_v45 = vpop.f32.mrb[43].mxu0  ;;  %v3079_v25 = vunpack.c.h.bf16 %v4214_v34 }
 0x3bb   : > { %v3093_v2 = vadd.f32 %v3061_v40, %v2793_v30  ;;  %v2866_v22 = vadd.f32 %v2865_v56, %v5641_v1  ;;  %v2797_v60 = vadd.f32 %v2796_v45, %v5643_v11  ;;  %v2867_v48 = vpop.f32.mrb[42].mxu1 }
 0x3bc   : > { %v3124_v51 = vmul.f32 0.70710677, %v3092_v14  ;;  %v3094_v39 = vadd.f32 %v3062_v26, %v2864_v54  ;;  %v3100_v12 = vadd.f32 %v3068_v50, %v2795_v19  ;;  %v2868_v32 = vadd.f32 %v2867_v48, %v5643_v11  ;;  %v2869_v59 = vpop.f32.mrb[43].mxu1 }
 0x3bd   : > { %v3125_v27 = vmul.f32 0.70710677, %v3093_v2  ;;  %v3095_v6 = vadd.f32 %v3063_v61, %v2866_v22  ;;  %v3101_v41 = vadd.f32 %v3069_v46, %v2797_v60  ;;  %v2870_v28 = vadd.f32 %v2869_v59, %v5643_v11 }
 0x3be   : > { %3156 = vst [vmem:[%s5708_s11] sm:$0xff] %v3124_v51  ;;  %v3126_v3 = vmul.f32 0.70710677, %v3094_v39  ;;  %v3132_v49 = vmul.f32 0.70710677, %v3100_v12  ;;  %v3102_v21 = vadd.f32 %v3070_v52, %v2868_v32  ;;  %v3086_v50 = vunpack.c.l.bf16 %v4216_v44 }
 0x3bf   : > { %3157 = vst [vmem:[%s5708_s11 + $0x8] sm:$0xff] %v3125_v27  ;;  %v3127_v9 = vmul.f32 0.70710677, %v3095_v6  ;;  %v3133_v5 = vmul.f32 0.70710677, %v3101_v41  ;;  %v3103_v43 = vadd.f32 %v3071_v10, %v2870_v28  ;;  %v3087_v46 = vunpack.c.h.bf16 %v4216_v44 }
 0x3c0   : > { %3158 = vst [vmem:[%s5708_s11 + $0x10] sm:$0xff] %v3126_v3  ;;  %3164 = vst [vmem:[%s5708_s11 + $0x40] sm:$0xff] %v3132_v49  ;;  %v3134_v24 = vmul.f32 0.70710677, %v3102_v21  ;;  %v2800_v55 = vpop.f32.mrb[44].mxu0 }
 0x3c1   : > { %3159 = vst [vmem:[%s5708_s11 + $0x18] sm:$0xff] %v3127_v9  ;;  %3165 = vst [vmem:[%s5708_s11 + $0x48] sm:$0xff] %v3133_v5  ;;  %v3135_v29 = vmul.f32 0.70710677, %v3103_v43  ;;  %v2801_v18 = vadd.f32 %v2800_v55, %v5645_v31  ;;  %v2802_v4 = vpop.f32.mrb[45].mxu0 }
 0x3c2   : > { %3166 = vst [vmem:[%s5708_s11 + $0x50] sm:$0xff] %v3134_v24  ;;  %v2803_v16 = vadd.f32 %v2802_v4, %v5645_v31  ;;  %v2873_v37 = vpop.f32.mrb[44].mxu1  ;;  %v2804_v36 = vpop.f32.mrb[46].mxu0 }
 0x3c3   : > { %3167 = vst [vmem:[%s5708_s11 + $0x58] sm:$0xff] %v3135_v29  ;;  %v3108_v40 = vadd.f32 %v3076_v15, %v2801_v18  ;;  %v2874_v63 = vadd.f32 %v2873_v37, %v5645_v31  ;;  %v2805_v42 = vadd.f32 %v2804_v36, %v5647_v38  ;;  %v2875_v35 = vpop.f32.mrb[45].mxu1  ;;  %v2806_v26 = vpop.f32.mrb[47].mxu0 }
 0x3c4   : > { %v3109_v30 = vadd.f32 %v3077_v33, %v2803_v16  ;;  %v2876_v53 = vadd.f32 %v2875_v35, %v5645_v31  ;;  %v2807_v17 = vadd.f32 %v2806_v26, %v5647_v38  ;;  %v2877_v61 = vpop.f32.mrb[46].mxu1 }
 0x3c5   : > { %v3140_v14 = vmul.f32 0.70710677, %v3108_v40  ;;  %v3110_v54 = vadd.f32 %v3078_v20, %v2874_v63  ;;  %v3116_v19 = vadd.f32 %v3084_v13, %v2805_v42  ;;  %v2878_v56 = vadd.f32 %v2877_v61, %v5647_v38  ;;  %v2879_v45 = vpop.f32.mrb[47].mxu1 }
 0x3c6   : > { %v3141_v62 = vmul.f32 0.70710677, %v3109_v30  ;;  %v3111_v52 = vadd.f32 %v3079_v25, %v2876_v53  ;;  %v3117_v2 = vadd.f32 %v3085_v47, %v2807_v17  ;;  %v2880_v22 = vadd.f32 %v2879_v45, %v5647_v38  ;;  %v4218_v30 = vld [vmem:[%s4827_s14 + $0x18] sm:$0xff]  ;;  %v4219_v17 = vld [vmem:[%s4827_s14 + $0x30] sm:$0xff] }
 0x3c7   : > { %3172 = vst [vmem:[%s5708_s11 + $0x80] sm:$0xff] %v3140_v14  ;;  %v3142_v60 = vmul.f32 0.70710677, %v3110_v54  ;;  %v3148_v48 = vmul.f32 0.70710677, %v3116_v19  ;;  %v3118_v10 = vadd.f32 %v3086_v50, %v2878_v56  ;;  %v3066_v53 = vunpack.c.l.bf16 %v4218_v30 }
 0x3c8   : > { %3173 = vst [vmem:[%s5708_s11 + $0x88] sm:$0xff] %v3141_v62  ;;  %v3143_v51 = vmul.f32 0.70710677, %v3111_v52  ;;  %v3149_v39 = vmul.f32 0.70710677, %v3117_v2  ;;  %v3119_v12 = vadd.f32 %v3087_v46, %v2880_v22  ;;  %v3072_v61 = vunpack.c.l.bf16 %v4219_v17 }
 0x3c9   : > { %3174 = vst [vmem:[%s5708_s11 + $0x90] sm:$0xff] %v3142_v60  ;;  %3180 = vst [vmem:[%s5708_s11 + $0xc0] sm:$0xff] %v3148_v48  ;;  %v3150_v32 = vmul.f32 0.70710677, %v3118_v10 }
 0x3ca   : > { %3175 = vst [vmem:[%s5708_s11 + $0x98] sm:$0xff] %v3143_v51  ;;  %3181 = vst [vmem:[%s5708_s11 + $0xc8] sm:$0xff] %v3149_v39  ;;  %v3151_v59 = vmul.f32 0.70710677, %v3119_v12 }
 0x3cb   : > { %3182 = vst [vmem:[%s5708_s11 + $0xd0] sm:$0xff] %v3150_v32 }
 0x3cc   : > { %3183 = vst [vmem:[%s5708_s11 + $0xd8] sm:$0xff] %v3151_v59 }
 0x3d7   : > { %v2916_v27 = vpop.f32.mrb[48].mxu0 }
 0x3d8   : > { %v2917_v6 = vadd.f32 %v2916_v27, %v5650_v58  ;;  %v2918_v41 = vpop.f32.mrb[49].mxu0 }
 0x3d9   : > { %v2919_v28 = vadd.f32 %v2918_v41, %v5650_v58  ;;  %v2989_v3 = vpop.f32.mrb[48].mxu1  ;;  %v2920_v49 = vpop.f32.mrb[50].mxu0 }
 0x3da   : > { %3032 = vst [vmem:[%s5658_s8 + $0x20] sm:$0xff] %v2917_v6  ;;  %v2990_v21 = vadd.f32 %v2989_v3, %v5650_v58  ;;  %v2921_v9 = vadd.f32 %v2920_v49, %v5652_v0  ;;  %v2991_v5 = vpop.f32.mrb[49].mxu1  ;;  %v2922_v43 = vpop.f32.mrb[51].mxu0 }
 0x3db   : > { %3033 = vst [vmem:[%s5658_s8 + $0x28] sm:$0xff] %v2919_v28  ;;  %v2992_v23 = vadd.f32 %v2991_v5, %v5650_v58  ;;  %v2923_v15 = vadd.f32 %v2922_v43, %v5652_v0  ;;  %v2993_v24 = vpop.f32.mrb[50].mxu1 }
 0x3dc   : > { %3034 = vst [vmem:[%s5658_s8 + $0x30] sm:$0xff] %v2990_v21  ;;  %3040 = vst [vmem:[%s5658_s8 + $0x60] sm:$0xff] %v2921_v9  ;;  %v2994_v55 = vadd.f32 %v2993_v24, %v5652_v0  ;;  %v2995_v33 = vpop.f32.mrb[51].mxu1 }
 0x3dd   : > { %3035 = vst [vmem:[%s5658_s8 + $0x38] sm:$0xff] %v2992_v23  ;;  %3041 = vst [vmem:[%s5658_s8 + $0x68] sm:$0xff] %v2923_v15  ;;  %v2996_v29 = vadd.f32 %v2995_v33, %v5652_v0 }
 0x3de   : > { %3042 = vst [vmem:[%s5658_s8 + $0x70] sm:$0xff] %v2994_v55 }
 0x3df   : > { %3043 = vst [vmem:[%s5658_s8 + $0x78] sm:$0xff] %v2996_v29  ;;  %v2926_v58 = vpop.f32.mrb[52].mxu0 }
 0x3e0   : > { %v2927_v18 = vadd.f32 %v2926_v58, %v5673_v7  ;;  %v2928_v4 = vpop.f32.mrb[53].mxu0 }
 0x3e1   : > { %v2929_v34 = vadd.f32 %v2928_v4, %v5673_v7  ;;  %v2999_v20 = vpop.f32.mrb[52].mxu1  ;;  %v2930_v57 = vpop.f32.mrb[54].mxu0 }
 0x3e2   : > { %3048 = vst [vmem:[%s5658_s8 + $0xa0] sm:$0xff] %v2927_v18  ;;  %v3000_v0 = vadd.f32 %v2999_v20, %v5673_v7  ;;  %v2931_v13 = vadd.f32 %v2930_v57, %v5676_v8  ;;  %v3001_v16 = vpop.f32.mrb[53].mxu1  ;;  %v2932_v37 = vpop.f32.mrb[55].mxu0 }
 0x3e3   : > { %3049 = vst [vmem:[%s5658_s8 + $0xa8] sm:$0xff] %v2929_v34  ;;  %v3002_v36 = vadd.f32 %v3001_v16, %v5673_v7  ;;  %v2933_v25 = vadd.f32 %v2932_v37, %v5676_v8  ;;  %v3003_v47 = vpop.f32.mrb[54].mxu1  ;;  %v4217_v7 = vld [vmem:[%s4827_s14 + $0x10] sm:$0xff] }
 0x3e4   : > { %3050 = vst [vmem:[%s5658_s8 + $0xb0] sm:$0xff] %v3000_v0  ;;  %3056 = vst [vmem:[%s5658_s8 + $0xe0] sm:$0xff] %v2931_v13  ;;  %v3004_v40 = vadd.f32 %v3003_v47, %v5676_v8  ;;  %v3005_v63 = vpop.f32.mrb[55].mxu1  ;;  %v3064_v35 = vunpack.c.l.bf16 %v4217_v7  ;;  %v3065_v44 = vunpack.c.h.bf16 %v4217_v7 }
 0x3e5   : > { %3051 = vst [vmem:[%s5658_s8 + $0xb8] sm:$0xff] %v3002_v36  ;;  %3057 = vst [vmem:[%s5658_s8 + $0xe8] sm:$0xff] %v2933_v25  ;;  %v3006_v42 = vadd.f32 %v3005_v63, %v5676_v8 }
 0x3e6   : > { %3058 = vst [vmem:[%s5658_s8 + $0xf0] sm:$0xff] %v3004_v40 }
 0x3e7   : > { %3059 = vst [vmem:[%s5658_s8 + $0xf8] sm:$0xff] %v3006_v42  ;;  %v2936_v26 = vpop.f32.mrb[56].mxu0 }
 0x3e8   : > { %v2937_v8 = vadd.f32 %v2936_v26, %v5641_v1  ;;  %v2938_v50 = vpop.f32.mrb[57].mxu0 }
 0x3e9   : > { %4328 = shalt.err (!%p4325_p1)
}
 0x3ea   : > { %s4329_s17 = scalar_lea.hbm %s5779_s25, 4096  ;;  %s4333_s26 = scalar_lea.hbm %s6003_s28, 32768 }
 0x3eb   : > { %p4330_p3 = scmp.ne.s32.totalorder %s5779_s25, %s4329_s17  ;;  %p4334_p6 = scmp.lt.u32.totalorder %s5779_s25, %s6003_s28 }
 0x3ec   : > { %p4335_p0 = scmp.lt.u32.totalorder %s4333_s26, %s4329_s17  ;;  %p4337_p4 = scmp.lt.u32.totalorder %s4329_s17, %s5779_s25 }
 0x3ed   : > { %p4331_p2 = pnand %p4330_p3, %p6004_p10 }
 0x3ee   : > { %p4336_p12 = por %p4335_p0, %p4334_p6 }
 0x3ef   : > { %p4332_p7 = pneg %p4331_p2 }
 0x3f0   : > { %p4338_p5 = por %p4337_p4, %p4336_p12 }
 0x3f2   : > { %p4339_p8 = pnand %p4338_p5, %p4332_p7 }
 0x3f4   : > { %4342 = shalt.err (!%p4339_p8)
}
 0x3f5   : > { %s4491_s6 = smov 1024   ;;  %s4492_s21 = smov 4096   ;;  %v2939_v46 = vadd.f32 %v2938_v50, %v5641_v1  ;;  %v3009_v14 = vpop.f32.mrb[56].mxu1  ;;  %v2940_v54 = vpop.f32.mrb[58].mxu0  ;;  %v3067_v19 = vunpack.c.h.bf16 %v4218_v30  ;;  %v3073_v56 = vunpack.c.h.bf16 %v4219_v17  ;;  %v3096_v45 = vadd.f32 %v3064_v35, %v2937_v8  ;;  %v4220_v60 = vld [vmem:[%s4827_s14 + $0x38] sm:$0xff]  ;;  %v4221_v23 = vld [vmem:[%s4827_s14 + $0x50] sm:$0xff] }
 0x3f6   : > { %s4493_s27 = smov 64   ;;  %v3010_v62 = vadd.f32 %v3009_v14, %v5641_v1  ;;  %v2941_v52 = vadd.f32 %v2940_v54, %v5643_v11  ;;  %v3011_v2 = vpop.f32.mrb[57].mxu1  ;;  %v2942_v22 = vpop.f32.mrb[59].mxu0  ;;  %v3074_v48 = vunpack.c.l.bf16 %v4220_v60  ;;  %v3075_v32 = vunpack.c.h.bf16 %v4220_v60  ;;  %v4222_v34 = vld [vmem:[%s4827_s14 + $0x58] sm:$0xff]  ;;  %v4223_v57 = vld [vmem:[%s4827_s14 + $0x70] sm:$0xff]  ;;  %s3189_s1 = scalar_lea.sflag [#allocation4], %s4823_s19 }
 0x3f7   : > { %3874 = dma.vmem_to_hbm [thread:$0]  (%p6004_p10), %s5781_s12, 4096, %s5779_s25, %s3194_s23, %s4491_s6, %s4492_s21, %s4493_s27   ;;  %v3097_v10 = vadd.f32 %v3065_v44, %v2939_v46  ;;  %v3012_v51 = vadd.f32 %v3011_v2, %v5641_v1  ;;  %v2943_v39 = vadd.f32 %v2942_v22, %v5643_v11  ;;  %v3013_v12 = vpop.f32.mrb[58].mxu1  ;;  %v3128_v59 = vmul.f32 0.70710677, %v3096_v45  ;;  %v2946_v29 = vpop.f32.mrb[60].mxu0 }
 0x3f8   : > { %v3098_v27 = vadd.f32 %v3066_v53, %v3010_v62  ;;  %v3104_v6 = vadd.f32 %v3072_v61, %v2941_v52  ;;  %v3014_v41 = vadd.f32 %v3013_v12, %v5643_v11  ;;  %v3015_v28 = vpop.f32.mrb[59].mxu1  ;;  %v3080_v15 = vunpack.c.l.bf16 %v4221_v23  ;;  %v2948_v4 = vpop.f32.mrb[61].mxu0  ;;  %v4224_v26 = vld [vmem:[%s4827_s14 + $0x78] sm:$0xff]  ;;  %s3209_s14 = sshll.u32 %s5708_s11, 4  ;;  %s6005_s23 = sld [smem:[#allocation33_spill]]  ;;  %s5858_s14 = int_to_ptr.vmem [resolvable:$true] %s3209_s14 }
 0x3f9   : > { %v3129_v3 = vmul.f32 0.70710677, %v3097_v10  ;;  %v3099_v49 = vadd.f32 %v3067_v19, %v3012_v51  ;;  %v3105_v21 = vadd.f32 %v3073_v56, %v2943_v39  ;;  %v3016_v9 = vadd.f32 %v3015_v28, %v5643_v11  ;;  %3160 = vst [vmem:[%s5708_s11 + $0x20] sm:$0xff] %v3128_v59  ;;  %v3019_v37 = vpop.f32.mrb[60].mxu1  ;;  %v2950_v36 = vpop.f32.mrb[62].mxu0  ;;  %s4343_s24 = scalar_lea.vmem %s5858_s14, 4096 }
 0x3fa   : > { %v3130_v1 = vmul.f32 0.70710677, %v3098_v27  ;;  %v3136_v5 = vmul.f32 0.70710677, %v3104_v6  ;;  %v3106_v43 = vadd.f32 %v3074_v48, %v3014_v41  ;;  %v3081_v58 = vunpack.c.h.bf16 %v4221_v23  ;;  %v3021_v7 = vpop.f32.mrb[61].mxu1  ;;  %v2952_v35 = vpop.f32.mrb[63].mxu0  ;;  %p4344_p9 = scmp.ne.s32.totalorder %s5858_s14, %s4343_s24 }
 0x3fb   : > { %3161 = vst [vmem:[%s5708_s11 + $0x28] sm:$0xff] %v3129_v3  ;;  %v3131_v24 = vmul.f32 0.70710677, %v3099_v49  ;;  %v3137_v55 = vmul.f32 0.70710677, %v3105_v21  ;;  %v3107_v33 = vadd.f32 %v3075_v32, %v3016_v9  ;;  %v2947_v18 = vadd.f32 %v2946_v29, %v5645_v31  ;;  %v3023_v53 = vpop.f32.mrb[62].mxu1 }
 0x3fc   : > { %3162 = vst [vmem:[%s5708_s11 + $0x30] sm:$0xff] %v3130_v1  ;;  %3168 = vst [vmem:[%s5708_s11 + $0x60] sm:$0xff] %v3136_v5  ;;  %v3138_v11 = vmul.f32 0.70710677, %v3106_v43  ;;  %v3082_v20 = vunpack.c.l.bf16 %v4222_v34  ;;  %v3088_v0 = vunpack.c.l.bf16 %v4223_v57  ;;  %v2949_v16 = vadd.f32 %v2948_v4, %v5645_v31  ;;  %v3025_v19 = vpop.f32.mrb[63].mxu1  ;;  %p4345_p11 = pnand %p4344_p9, %p6004_p10  ;;  %s4494_s17 = smov [#allocation8]  }
 0x3fd   : > { %3163 = vst [vmem:[%s5708_s11 + $0x38] sm:$0xff] %v3131_v24  ;;  %3169 = vst [vmem:[%s5708_s11 + $0x68] sm:$0xff] %v3137_v55  ;;  %v3139_v13 = vmul.f32 0.70710677, %v3107_v33  ;;  %v3083_v25 = vunpack.c.h.bf16 %v4222_v34  ;;  %v3089_v47 = vunpack.c.h.bf16 %v4223_v57  ;;  %v3112_v40 = vadd.f32 %v3080_v15, %v2947_v18  ;;  %s4347_s0 = sshll.u32 %s4494_s17, 4  ;;  %s4348_s0 = int_to_ptr.vmem [resolvable:$false] %s4347_s0 }
 0x3fe   : > { %3170 = vst [vmem:[%s5708_s11 + $0x70] sm:$0xff] %v3138_v11  ;;  %v3020_v63 = vadd.f32 %v3019_v37, %v5645_v31  ;;  %v2951_v42 = vadd.f32 %v2950_v36, %v5647_v38  ;;  %v3090_v44 = vunpack.c.l.bf16 %v4224_v26  ;;  %v3113_v8 = vadd.f32 %v3081_v58, %v2949_v16  ;;  %s5856_s3 = scalar_lea.hbm %s6005_s23, %s3605_s15  ;;  %p4346_p13 = pneg %p4345_p11 }
 0x3ff   : > { %3171 = vst [vmem:[%s5708_s11 + $0x78] sm:$0xff] %v3139_v13  ;;  %v3022_v50 = vadd.f32 %v3021_v7, %v5645_v31  ;;  %v2953_v30 = vadd.f32 %v2952_v35, %v5647_v38  ;;  %v3091_v17 = vunpack.c.h.bf16 %v4224_v26  ;;  %v3144_v61 = vmul.f32 0.70710677, %v3112_v40  ;;  %s4349_s30 = scalar_lea.vmem %s4348_s0, 8192  ;;  %p4350_p1 = scmp.lt.s32.totalorder %s5858_s14, %s4348_s0 }
 0x400   : > { %v3114_v46 = vadd.f32 %v3082_v20, %v3020_v63  ;;  %v3120_v14 = vadd.f32 %v3088_v0, %v2951_v42  ;;  %v3024_v54 = vadd.f32 %v3023_v53, %v5647_v38  ;;  %v3145_v56 = vmul.f32 0.70710677, %v3113_v8  ;;  %p4351_p3 = scmp.lt.s32.totalorder %s4349_s30, %s4343_s24 }
 0x401   : > { %v3115_v45 = vadd.f32 %v3083_v25, %v3022_v50  ;;  %v3121_v62 = vadd.f32 %v3089_v47, %v2953_v30  ;;  %v3026_v31 = vadd.f32 %v3025_v19, %v5647_v38  ;;  %3176 = vst [vmem:[%s5708_s11 + $0xa0] sm:$0xff] %v3144_v61 }
 0x402   : > { %v3146_v52 = vmul.f32 0.70710677, %v3114_v46  ;;  %v3152_v2 = vmul.f32 0.70710677, %v3120_v14  ;;  %v3122_v22 = vadd.f32 %v3090_v44, %v3024_v54  ;;  %3177 = vst [vmem:[%s5708_s11 + $0xa8] sm:$0xff] %v3145_v56  ;;  %p4352_p2 = por %p4351_p3, %p4350_p1 }
 0x403   : > { %v3147_v60 = vmul.f32 0.70710677, %v3115_v45  ;;  %v3153_v48 = vmul.f32 0.70710677, %v3121_v62  ;;  %v3123_v10 = vadd.f32 %v3091_v17, %v3026_v31 }
 0x404   : > { %3178 = vst [vmem:[%s5708_s11 + $0xb0] sm:$0xff] %v3146_v52  ;;  %3184 = vst [vmem:[%s5708_s11 + $0xe0] sm:$0xff] %v3152_v2  ;;  %v3154_v51 = vmul.f32 0.70710677, %v3122_v22  ;;  %p4353_p7 = pnand %p4352_p2, %p4346_p13 }
 0x405   : > { %3179 = vst [vmem:[%s5708_s11 + $0xb8] sm:$0xff] %v3147_v60  ;;  %3185 = vst [vmem:[%s5708_s11 + $0xe8] sm:$0xff] %v3153_v48  ;;  %v3155_v38 = vmul.f32 0.70710677, %v3123_v10 }
 0x406   : > { %3186 = vst [vmem:[%s5708_s11 + $0xf0] sm:$0xff] %v3154_v51 }
 0x407   : > { %3187 = vst [vmem:[%s5708_s11 + $0xf8] sm:$0xff] %v3155_v38 }
 0x408   : > { %4356 = shalt.err (!%p4353_p7)
}
 0x409   : > { %s4357_s11 = scalar_lea.hbm %s5856_s3, 4096  ;;  %s4361_s26 = scalar_lea.hbm %s6005_s23, 32768 }
 0x40a   : > { %p4358_p6 = scmp.ne.s32.totalorder %s5856_s3, %s4357_s11  ;;  %p4362_p4 = scmp.lt.u32.totalorder %s5856_s3, %s6005_s23 }
 0x40b   : > { %p4363_p5 = scmp.lt.u32.totalorder %s4361_s26, %s4357_s11  ;;  %p4365_p9 = scmp.lt.u32.totalorder %s4357_s11, %s5856_s3 }
 0x40c   : > { %p4359_p0 = pnand %p4358_p6, %p6004_p10 }
 0x40d   : > { %p4364_p8 = por %p4363_p5, %p4362_p4 }
 0x40e   : > { %p4360_p12 = pneg %p4359_p0 }
 0x40f   : > { %p4366_p11 = por %p4365_p9, %p4364_p8 }
 0x411   : > { %p4367_p13 = pnand %p4366_p11, %p4360_p12 }
 0x413   : > { %4370 = shalt.err (!%p4367_p13)
}
 0x414   : > { %3873 = dma.vmem_to_hbm [thread:$0]  (%p6004_p10), %s5858_s14, 4096, %s5856_s3, %s3189_s1, %s4491_s6, %s4492_s21, %s4493_s27  }
 0x415 PF: > { %s6006_s12 = sld [smem:[#allocation21_spill]]  ;;  %s6007_s25 = sld [smem:[#allocation17_spill]] }
 0x416   : > { %s6008_s24 = sld [smem:[#allocation26_spill]] }
 0x41b   : > { %p3895_p1 = scmp.ge.s32.totalorder %s6006_s12, 2  ;;  %s3242_s17 = sand.u32 1, %s6007_s25  }
 0x41c   : > { %p6009_p3 = scmp.ne.s32.totalorder %s6008_s24, 0  ;;  %s3243_s0 = scalar_lea.sflag [#allocation4], %s3242_s17 }
 0x41e   : > { %p3888_p2 = pnand %p3895_p1, %p6009_p3 }
 0x420   : > { %4428 = dma.done.wait (!%p3888_p2), %s3243_s0, 4096  }
 0x421   : > { %4430 = vsyncadd (!%p3888_p2), %s3243_s0, 4294963200  ;;  %s3252_s4 = scalar_lea.sflag [#allocation10], %s3242_s17 }
 0x422   : > { %4432 = dma.done.wait (!%p3888_p2), %s3252_s4, 4096  }
 0x423   : > { %4434 = vsyncadd (!%p3888_p2), %s3252_s4, 4294963200  ;;  %s32_s19 = sadd.s32 1, %s6006_s12   ;;  %s6010_s11 = sld [smem:[#allocation16_spill]] }
 0x424   : > { %p29_p7 = scmp.ge.s32.totalorder %s32_s19, 10   ;;  %s6011_s6 = sld [smem:[#allocation24_spill]] }
 0x425   : > { %s6012_s21 = sld [smem:[#allocation18_spill]]  ;;  %s6013_s14 = sld [smem:[#allocation25_spill]] }
 0x426   : > { %s6014_s15 = sld [smem:[#allocation20_spill]]  ;;  %s6015_s17 = sld [smem:[#allocation22_spill]] }
 0x427   : > { %s6016_s27 = sld [smem:[#allocation23_spill]]  ;;  %s6017_s30 = smov %s4441_s10 }
 0x428   : > { %s6020_s12 = smov %s4453_s13  ;;  %s6022_s16 = smov %s4473_s18 }
 0x429   : > { %s6018_s10 = smov %s6010_s11  ;;  %31 = sbr.rel (!%p29_p7) target bundleno = 22 (0x16), region = 140 }
 0x42a   : > { %s6019_s11 = smov %s6011_s6 }
 0x42b   : > { %s6021_s13 = smov %s6012_s21 }
 0x42d   : > { %s6023_s18 = smov %s6016_s27 }
 0x430   :  { %3257 = vsyncpa [#allocation3], 1 }
 0x431   :  { %3259 = vsyncpa [#allocation3 + $0x1], 1 }
 0x432   :  { %3260 = vsyncpa [#allocation6], 1 }
 0x433   :  { %3262 = vsyncpa [#allocation6 + $0x1], 1 }
 0x434   :  { %3263 = vsyncpa [#allocation4], 1 }
 0x435   :  { %3265 = vsyncpa [#allocation4 + $0x1], 1 }
 0x436   :  { %3266 = vsyncpa [#allocation10], 1 }
 0x437   :  { %3268 = vsyncpa [#allocation10 + $0x1], 1 }

</bundles_post_ra>
